<compile_context>
chip_gen: v7x
topology: tpu7x:2x2x1
jax: 0.10.0
libtpu: 0.0.40
codegen_flags: <defaults>
</compile_context>

<pallas_src>
import functools

import numpy as np
import jax
import jax.numpy as jnp
from jax.experimental import pallas as pl
from jax.experimental.pallas import tpu as pltpu


# ============================================================================
# Fused kernel: conv1+relu+pool -> conv2+relu+pool -> fc1+relu -> fc2
# ============================================================================
def _lenet_fused_kernel(x_ref, w1_ref, b1_ref, w2_ref, b2_ref,
                        wf1_ref, bf1_ref, wf2_ref, bf2_ref, o_ref,
                        *, PH1, TF1, PH2, NT2):
    """One image per grid step.

    x_ref  : (1, H/2, 2*W*Cin) f32   input rows pair-folded onto lanes
    w1_ref : (2*TF1*W*Cin, 512) bf16 conv1 block-Toeplitz; 4 column groups of 128
             lanes = the four (dh, dw) 2x2-pool candidates (each PW1*C1 real cols,
             zero-padded to 128)
    w2_ref : (NT2*128, 512)     bf16 same construction for conv2
    wf1_ref: (PH2*128, 128)     bf16 fc1 with the PyTorch (C,H,W) flatten folded in
    wf2_ref: (128, 128)         bf16 fc2 (120 -> 102, zero-padded)
    b*_ref : (1, 128)           f32  biases tiled/padded to the 128-lane layouts
    o_ref  : (1, 1, 128)        f32  logits (lanes >= num_classes are 0)
    """
    # ---- stage 1: conv1 + bias + ReLU + 2x2 maxpool (one MXU matmul) ----
    x = x_ref[...][0]                                                    # (H/2, 2*W*Cin)
    lhs1 = jnp.concatenate([x[j:j + PH1, :] for j in range(TF1)], axis=1)
    y1 = jnp.dot(lhs1.astype(jnp.bfloat16), w1_ref[...],
                 preferred_element_type=jnp.float32)                    # (PH1, 512)
    m1 = jnp.maximum(jnp.maximum(y1[:, 0:128], y1[:, 128:256]),
                     jnp.maximum(y1[:, 256:384], y1[:, 384:512]))       # pool over (dh,dw)
    a1 = jnp.maximum(m1 + b1_ref[...], 0.0)                             # (PH1, 128) f32

    # ---- stage 2: conv2 + bias + ReLU + 2x2 maxpool (one MXU matmul) ----
    lhs2 = jnp.concatenate(
        [jnp.concatenate([a1[2 * p + t:2 * p + t + 1, :] for t in range(NT2)], axis=1)
         for p in range(PH2)], axis=0)                                  # (PH2, NT2*128)
    y2 = jnp.dot(lhs2.astype(jnp.bfloat16), w2_ref[...],
                 preferred_element_type=jnp.float32)                    # (PH2, 512)
    m2 = jnp.maximum(jnp.maximum(y2[:, 0:128], y2[:, 128:256]),
                     jnp.maximum(y2[:, 256:384], y2[:, 384:512]))
    a2 = jnp.maximum(m2 + b2_ref[...], 0.0)                             # (PH2, 128) f32

    # ---- fc1 + ReLU + fc2 ----
    feat = jnp.concatenate([a2[h:h + 1, :] for h in range(PH2)], axis=1)  # (1, PH2*128)
    h1 = jnp.dot(feat.astype(jnp.bfloat16), wf1_ref[...],
                 preferred_element_type=jnp.float32)
    h1 = jnp.maximum(h1 + bf1_ref[...], 0.0)                            # (1, 128)
    out = jnp.dot(h1.astype(jnp.bfloat16), wf2_ref[...],
                  preferred_element_type=jnp.float32) + bf2_ref[...]    # (1, 128)
    o_ref[...] = out[None]


# ============================================================================
# One-time weight preparation (hoisted out of the forward pass)
# ============================================================================
def _conv_toeplitz(w_hwio, bias, *, w_in, c_in, kin_pad, pw, n_taps):
    """Block-Toeplitz conv weight for one stage.

    Input row layout: lane = w*c_in + ci for w < w_in (lanes >= w_in*c_in are padding).
    LHS row layout  : lane = t*kin_pad + input_lane, taps t = dh + kh.
    Columns         : group g = 2*dh + dw (4 groups of 128 lanes), within a group
                      col = pw*Cout + co  (pool candidates live in the column groups).
    """
    KH, KW, Cin, Cout = w_hwio.shape
    assert Cin == c_in
    w = np.asarray(w_hwio, np.float32)
    big = np.zeros((n_taps, kin_pad, 4, 128), np.float32)
    for t in range(n_taps):
        for dh in (0, 1):
            kh = t - dh
            if not (0 <= kh < KH):
                continue
            for dw in (0, 1):
                g = 2 * dh + dw
                for p in range(pw):
                    for kw in range(KW):
                        wp = 2 * p + dw + kw
                        if wp >= w_in:
                            continue
                        big[t, wp * Cin:(wp + 1) * Cin, g,
                            p * Cout:(p + 1) * Cout] = w[kh, kw]
    wbig = big.reshape(n_taps * kin_pad, 4 * 128)
    brow = np.zeros((1, 128), np.float32)
    brow[0, :pw * Cout] = np.tile(np.asarray(bias, np.float32), pw)
    return wbig, brow


def prepare_params(params, input_size, img_size, output_size):
    """Build all kernel weights once (block-Toeplitz, pool parity, lane padding,
    flatten permutation, bf16 cast).  Returns (device arrays, static meta)."""
    H = W = img_size
    Cin = input_size
    KH1, _, _, C1 = params["w1"].shape
    KH2, _, _, C2 = params["w2"].shape
    OH1, OW1 = H - KH1 + 1, W - KH1 + 1
    PH1, PW1 = OH1 // 2, OW1 // 2
    OH2, OW2 = PH1 - KH2 + 1, PW1 - KH2 + 1
    PH2, PW2 = OH2 // 2, OW2 // 2
    F1 = params["wfc1"].shape[1]
    OUT = params["wfc2"].shape[1]

    # Layout limits of this kernel (fine at LeNet scale / the tested img_size).
    assert H % 2 == 0
    assert PW1 * C1 <= 128 and PW2 * C2 <= 128 and F1 <= 128 and OUT <= 128
    assert params["wfc1"].shape[0] == C2 * PH2 * PW2

    TF1 = (KH1 + 2) // 2                      # folded (row-pair) tap windows, stage 1
    NT1 = 2 * TF1                             # taps covered by the windows (>= KH1+1)
    NT2 = KH2 + 1                             # taps t = dh + kh, stage 2
    K1 = W * Cin
    assert TF1 - 1 + PH1 <= H // 2            # stage-1 windows stay in bounds
    assert 2 * (PH2 - 1) + NT2 - 1 <= PH1 - 1  # stage-2 taps stay in bounds

    wbig1, b1row = _conv_toeplitz(params["w1"], params["b1"],
                                  w_in=W, c_in=Cin, kin_pad=K1, pw=PW1, n_taps=NT1)
    wbig2, b2row = _conv_toeplitz(params["w2"], params["b2"],
                                  w_in=PW1, c_in=C1, kin_pad=128, pw=PW2, n_taps=NT2)

    # fc1: fold PyTorch's (C, H, W) flatten order into the weight rows; pad to 128 lanes.
    wfc1 = np.asarray(params["wfc1"], np.float32)
    wf1big = np.zeros((PH2 * 128, 128), np.float32)
    for h in range(PH2):
        for w_ in range(PW2):
            for c in range(C2):
                wf1big[h * 128 + w_ * C2 + c, :F1] = wfc1[c * PH2 * PW2 + h * PW2 + w_, :]
    bf1row = np.zeros((1, 128), np.float32)
    bf1row[0, :F1] = np.asarray(params["bfc1"], np.float32)

    wf2big = np.zeros((128, 128), np.float32)
    wf2big[:F1, :OUT] = np.asarray(params["wfc2"], np.float32)
    bf2row = np.zeros((1, 128), np.float32)
    bf2row[0, :OUT] = np.asarray(params["bfc2"], np.float32)

    prep = {
        "w1": jnp.asarray(wbig1, jnp.bfloat16), "b1": jnp.asarray(b1row, jnp.float32),
        "w2": jnp.asarray(wbig2, jnp.bfloat16), "b2": jnp.asarray(b2row, jnp.float32),
        "wf1": jnp.asarray(wf1big, jnp.bfloat16), "bf1": jnp.asarray(bf1row, jnp.float32),
        "wf2": jnp.asarray(wf2big, jnp.bfloat16), "bf2": jnp.asarray(bf2row, jnp.float32),
    }
    meta = dict(PH1=PH1, TF1=TF1, PH2=PH2, NT2=NT2, OUT=OUT, K1=K1)
    return prep, meta


# ============================================================================
# Forward pass: one pallas_call per batch
# ============================================================================
def make_forward(meta):
    PH1, TF1, PH2, NT2, OUT, K1 = (meta[k] for k in
                                   ("PH1", "TF1", "PH2", "NT2", "OUT", "K1"))

    @jax.jit
    def forward(prep, x_nchw):
        B, Cin, H, W = x_nchw.shape
        assert W * Cin == K1 and H % 2 == 0
        # NCHW -> NHWC, then fold row pairs onto lanes (free row-major reshape):
        # lets the kernel build the conv-1 im2col with unit-stride slices only.
        xp = (jnp.transpose(x_nchw, (0, 2, 3, 1))
                 .reshape(B, H // 2, 2 * W * Cin)
                 .astype(jnp.float32))

        k1_rows = 2 * TF1 * K1
        k2_rows = NT2 * 128
        flops = 2 * B * (PH1 * k1_rows * 512 + PH2 * k2_rows * 512
                         + PH2 * 128 * 128 + 128 * 128)
        wbytes = 2 * (k1_rows * 512 + k2_rows * 512 + PH2 * 128 * 128 + 128 * 128) \
            + 4 * (4 * 128)
        bytes_accessed = xp.size * 4 + B * 128 * 4 + wbytes

        kern = functools.partial(_lenet_fused_kernel,
                                 PH1=PH1, TF1=TF1, PH2=PH2, NT2=NT2)
        out = pl.pallas_call(
            kern,
            out_shape=jax.ShapeDtypeStruct((B, 1, 128), jnp.float32),
            grid=(B,),
            in_specs=[
                pl.BlockSpec((1, H // 2, 2 * W * Cin), lambda b: (b, 0, 0)),
                pl.BlockSpec((k1_rows, 512), lambda b: (0, 0)),
                pl.BlockSpec((1, 128), lambda b: (0, 0)),
                pl.BlockSpec((k2_rows, 512), lambda b: (0, 0)),
                pl.BlockSpec((1, 128), lambda b: (0, 0)),
                pl.BlockSpec((PH2 * 128, 128), lambda b: (0, 0)),
                pl.BlockSpec((1, 128), lambda b: (0, 0)),
                pl.BlockSpec((128, 128), lambda b: (0, 0)),
                pl.BlockSpec((1, 128), lambda b: (0, 0)),
            ],
            out_specs=pl.BlockSpec((1, 1, 128), lambda b: (b, 0, 0)),
            compiler_params=pltpu.CompilerParams(
                dimension_semantics=("parallel",)),        # v7x: batch split across TCs
            cost_estimate=pl.CostEstimate(
                flops=flops, transcendentals=0, bytes_accessed=bytes_accessed),
        )(xp, prep["w1"], prep["b1"], prep["w2"], prep["b2"],
          prep["wf1"], prep["bf1"], prep["wf2"], prep["bf2"])
        return out.reshape(B, 128)[:, :OUT]

    return forward


# ============================================================================
# Pure-JAX f32 reference (matches the PyTorch module)
# ============================================================================
def reference_forward(params, x_nchw):
    x = jnp.transpose(x_nchw, (0, 2, 3, 1))

    def conv(x, w, b):
        y = jax.lax.conv_general_dilated(
            x, w, window_strides=(1, 1), padding="VALID",
            dimension_numbers=("NHWC", "HWIO", "NHWC"))
        return jax.nn.relu(y + b)

    def pool(x):
        return jax.lax.reduce_window(
            x, -jnp.inf, jax.lax.max, (1, 2, 2, 1), (1, 2, 2, 1), "VALID")

    x = pool(conv(x, params["w1"], params["b1"]))
    x = pool(conv(x, params["w2"], params["b2"]))
    B = x.shape[0]
    x = jnp.transpose(x, (0, 3, 1, 2)).reshape(B, -1)       # PyTorch (C,H,W) flatten
    x = jax.nn.relu(x @ params["wfc1"] + params["bfc1"])
    return x @ params["wfc2"] + params["bfc2"]


if __name__ == "__main__":
    INPUT_SIZE, IMG_SIZE, OUTPUT_SIZE = 3, 32, 102
    BATCH = 2

    # spatial size after (conv5 -> pool2) twice, same arithmetic as getOutputConv
    sp = ((IMG_SIZE - 4) // 2 - 4) // 2                     # 5 for IMG_SIZE=32
    flat = 16 * sp * sp                                     # channel * width * height

    key = jax.random.PRNGKey(0)
    ks = jax.random.split(key, 9)
    params = {
        "w1": jax.random.normal(ks[0], (5, 5, INPUT_SIZE, 6), jnp.float32) * 0.1,
        "b1": jax.random.normal(ks[1], (6,), jnp.float32) * 0.1,
        "w2": jax.random.normal(ks[2], (5, 5, 6, 16), jnp.float32) * 0.1,
        "b2": jax.random.normal(ks[3], (16,), jnp.float32) * 0.1,
        "wfc1": jax.random.normal(ks[4], (flat, 120), jnp.float32) * 0.05,
        "bfc1": jax.random.normal(ks[5], (120,), jnp.float32) * 0.05,
        "wfc2": jax.random.normal(ks[6], (120, OUTPUT_SIZE), jnp.float32) * 0.05,
        "bfc2": jax.random.normal(ks[7], (OUTPUT_SIZE,), jnp.float32) * 0.05,
    }
    x = jax.random.normal(ks[8], (BATCH, INPUT_SIZE, IMG_SIZE, IMG_SIZE), jnp.float32)

    # one-time weight prep (hoisted out of the forward), then the fused kernel
    prep, meta = prepare_params(params, INPUT_SIZE, IMG_SIZE, OUTPUT_SIZE)
    forward = make_forward(meta)

    out = forward(prep, x)
    jax.block_until_ready(out)
    assert out.shape == (BATCH, OUTPUT_SIZE), out.shape
    assert bool(jnp.all(jnp.isfinite(out)))

    # bf16 MXU path vs f32 reference -> generous tolerance
    ref = reference_forward(params, x)
    err = float(jnp.max(jnp.abs(out - ref)))
    assert err < 0.2, f"max |out - ref| = {err}"
    print("KERNEL_OK")
</pallas_src>

<mosaic_0001>
module attributes {stable_mosaic.version = 11 : i64} {
  func.func @_lenet_fused_kernel(%arg0: i32, %arg1: memref<1x16x192xf32, #tpu.memory_space<vmem>>, %arg2: memref<576x512xbf16, #tpu.memory_space<vmem>>, %arg3: memref<1x128xf32, #tpu.memory_space<vmem>>, %arg4: memref<768x512xbf16, #tpu.memory_space<vmem>>, %arg5: memref<1x128xf32, #tpu.memory_space<vmem>>, %arg6: memref<640x128xbf16, #tpu.memory_space<vmem>>, %arg7: memref<1x128xf32, #tpu.memory_space<vmem>>, %arg8: memref<128x128xbf16, #tpu.memory_space<vmem>>, %arg9: memref<1x128xf32, #tpu.memory_space<vmem>>, %arg10: memref<1x1x128xf32, #tpu.memory_space<vmem>>) attributes {dimension_semantics = [#tpu.dimension_semantics<parallel>], iteration_bounds = array<i64: 2>, scalar_prefetch = 0 : i64, scratch_operands = 0 : i64, tpu.core_type = #tpu.core_type<tc>, window_params = [{transform_indices = @transform_0, window_bounds = array<i64: 1, 16, 192>}, {pipeline_mode = #tpu.pipeline_mode<synchronous>, transform_indices = @transform_1, window_bounds = array<i64: 576, 512>}, {pipeline_mode = #tpu.pipeline_mode<synchronous>, transform_indices = @transform_2, window_bounds = array<i64: 1, 128>}, {pipeline_mode = #tpu.pipeline_mode<synchronous>, transform_indices = @transform_3, window_bounds = array<i64: 768, 512>}, {pipeline_mode = #tpu.pipeline_mode<synchronous>, transform_indices = @transform_4, window_bounds = array<i64: 1, 128>}, {pipeline_mode = #tpu.pipeline_mode<synchronous>, transform_indices = @transform_5, window_bounds = array<i64: 640, 128>}, {pipeline_mode = #tpu.pipeline_mode<synchronous>, transform_indices = @transform_6, window_bounds = array<i64: 1, 128>}, {pipeline_mode = #tpu.pipeline_mode<synchronous>, transform_indices = @transform_7, window_bounds = array<i64: 128, 128>}, {pipeline_mode = #tpu.pipeline_mode<synchronous>, transform_indices = @transform_8, window_bounds = array<i64: 1, 128>}, {transform_indices = @transform_9, window_bounds = array<i64: 1, 1, 128>}]} {
    %c0 = arith.constant 0 : index
    %c0_0 = arith.constant 0 : index
    %c0_1 = arith.constant 0 : index
    %0 = vector.load %arg1[%c0, %c0_0, %c0_1] : memref<1x16x192xf32, #tpu.memory_space<vmem>>, vector<1x16x192xf32>
    %1 = vector.shape_cast %0 : vector<1x16x192xf32> to vector<16x192xf32>
    %2 = vector.extract_strided_slice %1 {offsets = [0, 0], sizes = [14, 192], strides = [1, 1]} : vector<16x192xf32> to vector<14x192xf32>
    %3 = vector.extract_strided_slice %1 {offsets = [1, 0], sizes = [14, 192], strides = [1, 1]} : vector<16x192xf32> to vector<14x192xf32>
    %4 = vector.extract_strided_slice %1 {offsets = [2, 0], sizes = [14, 192], strides = [1, 1]} : vector<16x192xf32> to vector<14x192xf32>
    %5 = tpu.concatenate %2, %3, %4 in 1 : vector<14x192xf32>, vector<14x192xf32>, vector<14x192xf32> -> vector<14x576xf32>
    %6 = arith.truncf %5 : vector<14x576xf32> to vector<14x576xbf16>
    %c0_2 = arith.constant 0 : index
    %c0_3 = arith.constant 0 : index
    %7 = vector.load %arg2[%c0_2, %c0_3] : memref<576x512xbf16, #tpu.memory_space<vmem>>, vector<576x512xbf16>
    %cst = arith.constant dense<0.000000e+00> : vector<14x512xf32>
    %8 = tpu.matmul %6, %7, %cst {dimension_numbers = #tpu.dot_dimension_numbers<[1], [0], [0], [1], [0, 0, 1, 1], [], []>} : vector<14x576xbf16>, vector<576x512xbf16>, vector<14x512xf32> -> vector<14x512xf32>
    %9 = vector.extract_strided_slice %8 {offsets = [0, 0], sizes = [14, 128], strides = [1, 1]} : vector<14x512xf32> to vector<14x128xf32>
    %10 = vector.extract_strided_slice %8 {offsets = [0, 128], sizes = [14, 128], strides = [1, 1]} : vector<14x512xf32> to vector<14x128xf32>
    %11 = arith.maximumf %9, %10 : vector<14x128xf32>
    %12 = vector.extract_strided_slice %8 {offsets = [0, 256], sizes = [14, 128], strides = [1, 1]} : vector<14x512xf32> to vector<14x128xf32>
    %13 = vector.extract_strided_slice %8 {offsets = [0, 384], sizes = [14, 128], strides = [1, 1]} : vector<14x512xf32> to vector<14x128xf32>
    %14 = arith.maximumf %12, %13 : vector<14x128xf32>
    %15 = arith.maximumf %11, %14 : vector<14x128xf32>
    %c0_4 = arith.constant 0 : index
    %c0_5 = arith.constant 0 : index
    %16 = vector.load %arg3[%c0_4, %c0_5] : memref<1x128xf32, #tpu.memory_space<vmem>>, vector<1x128xf32>
    %17 = vector.broadcast %16 : vector<1x128xf32> to vector<14x128xf32>
    %18 = arith.addf %15, %17 : vector<14x128xf32>
    %cst_6 = arith.constant 0.000000e+00 : f32
    %19 = vector.broadcast %cst_6 : f32 to vector<14x128xf32>
    %20 = arith.maximumf %18, %19 : vector<14x128xf32>
    %21 = vector.extract_strided_slice %20 {offsets = [0, 0], sizes = [1, 128], strides = [1, 1]} : vector<14x128xf32> to vector<1x128xf32>
    %22 = vector.extract_strided_slice %20 {offsets = [1, 0], sizes = [1, 128], strides = [1, 1]} : vector<14x128xf32> to vector<1x128xf32>
    %23 = vector.extract_strided_slice %20 {offsets = [2, 0], sizes = [1, 128], strides = [1, 1]} : vector<14x128xf32> to vector<1x128xf32>
    %24 = vector.extract_strided_slice %20 {offsets = [3, 0], sizes = [1, 128], strides = [1, 1]} : vector<14x128xf32> to vector<1x128xf32>
    %25 = vector.extract_strided_slice %20 {offsets = [4, 0], sizes = [1, 128], strides = [1, 1]} : vector<14x128xf32> to vector<1x128xf32>
    %26 = vector.extract_strided_slice %20 {offsets = [5, 0], sizes = [1, 128], strides = [1, 1]} : vector<14x128xf32> to vector<1x128xf32>
    %27 = tpu.concatenate %21, %22, %23, %24, %25, %26 in 1 : vector<1x128xf32>, vector<1x128xf32>, vector<1x128xf32>, vector<1x128xf32>, vector<1x128xf32>, vector<1x128xf32> -> vector<1x768xf32>
    %28 = vector.extract_strided_slice %20 {offsets = [2, 0], sizes = [1, 128], strides = [1, 1]} : vector<14x128xf32> to vector<1x128xf32>
    %29 = vector.extract_strided_slice %20 {offsets = [3, 0], sizes = [1, 128], strides = [1, 1]} : vector<14x128xf32> to vector<1x128xf32>
    %30 = vector.extract_strided_slice %20 {offsets = [4, 0], sizes = [1, 128], strides = [1, 1]} : vector<14x128xf32> to vector<1x128xf32>
    %31 = vector.extract_strided_slice %20 {offsets = [5, 0], sizes = [1, 128], strides = [1, 1]} : vector<14x128xf32> to vector<1x128xf32>
    %32 = vector.extract_strided_slice %20 {offsets = [6, 0], sizes = [1, 128], strides = [1, 1]} : vector<14x128xf32> to vector<1x128xf32>
    %33 = vector.extract_strided_slice %20 {offsets = [7, 0], sizes = [1, 128], strides = [1, 1]} : vector<14x128xf32> to vector<1x128xf32>
    %34 = tpu.concatenate %28, %29, %30, %31, %32, %33 in 1 : vector<1x128xf32>, vector<1x128xf32>, vector<1x128xf32>, vector<1x128xf32>, vector<1x128xf32>, vector<1x128xf32> -> vector<1x768xf32>
    %35 = vector.extract_strided_slice %20 {offsets = [4, 0], sizes = [1, 128], strides = [1, 1]} : vector<14x128xf32> to vector<1x128xf32>
    %36 = vector.extract_strided_slice %20 {offsets = [5, 0], sizes = [1, 128], strides = [1, 1]} : vector<14x128xf32> to vector<1x128xf32>
    %37 = vector.extract_strided_slice %20 {offsets = [6, 0], sizes = [1, 128], strides = [1, 1]} : vector<14x128xf32> to vector<1x128xf32>
    %38 = vector.extract_strided_slice %20 {offsets = [7, 0], sizes = [1, 128], strides = [1, 1]} : vector<14x128xf32> to vector<1x128xf32>
    %39 = vector.extract_strided_slice %20 {offsets = [8, 0], sizes = [1, 128], strides = [1, 1]} : vector<14x128xf32> to vector<1x128xf32>
    %40 = vector.extract_strided_slice %20 {offsets = [9, 0], sizes = [1, 128], strides = [1, 1]} : vector<14x128xf32> to vector<1x128xf32>
    %41 = tpu.concatenate %35, %36, %37, %38, %39, %40 in 1 : vector<1x128xf32>, vector<1x128xf32>, vector<1x128xf32>, vector<1x128xf32>, vector<1x128xf32>, vector<1x128xf32> -> vector<1x768xf32>
    %42 = vector.extract_strided_slice %20 {offsets = [6, 0], sizes = [1, 128], strides = [1, 1]} : vector<14x128xf32> to vector<1x128xf32>
    %43 = vector.extract_strided_slice %20 {offsets = [7, 0], sizes = [1, 128], strides = [1, 1]} : vector<14x128xf32> to vector<1x128xf32>
    %44 = vector.extract_strided_slice %20 {offsets = [8, 0], sizes = [1, 128], strides = [1, 1]} : vector<14x128xf32> to vector<1x128xf32>
    %45 = vector.extract_strided_slice %20 {offsets = [9, 0], sizes = [1, 128], strides = [1, 1]} : vector<14x128xf32> to vector<1x128xf32>
    %46 = vector.extract_strided_slice %20 {offsets = [10, 0], sizes = [1, 128], strides = [1, 1]} : vector<14x128xf32> to vector<1x128xf32>
    %47 = vector.extract_strided_slice %20 {offsets = [11, 0], sizes = [1, 128], strides = [1, 1]} : vector<14x128xf32> to vector<1x128xf32>
    %48 = tpu.concatenate %42, %43, %44, %45, %46, %47 in 1 : vector<1x128xf32>, vector<1x128xf32>, vector<1x128xf32>, vector<1x128xf32>, vector<1x128xf32>, vector<1x128xf32> -> vector<1x768xf32>
    %49 = vector.extract_strided_slice %20 {offsets = [8, 0], sizes = [1, 128], strides = [1, 1]} : vector<14x128xf32> to vector<1x128xf32>
    %50 = vector.extract_strided_slice %20 {offsets = [9, 0], sizes = [1, 128], strides = [1, 1]} : vector<14x128xf32> to vector<1x128xf32>
    %51 = vector.extract_strided_slice %20 {offsets = [10, 0], sizes = [1, 128], strides = [1, 1]} : vector<14x128xf32> to vector<1x128xf32>
    %52 = vector.extract_strided_slice %20 {offsets = [11, 0], sizes = [1, 128], strides = [1, 1]} : vector<14x128xf32> to vector<1x128xf32>
    %53 = vector.extract_strided_slice %20 {offsets = [12, 0], sizes = [1, 128], strides = [1, 1]} : vector<14x128xf32> to vector<1x128xf32>
    %54 = vector.extract_strided_slice %20 {offsets = [13, 0], sizes = [1, 128], strides = [1, 1]} : vector<14x128xf32> to vector<1x128xf32>
    %55 = tpu.concatenate %49, %50, %51, %52, %53, %54 in 1 : vector<1x128xf32>, vector<1x128xf32>, vector<1x128xf32>, vector<1x128xf32>, vector<1x128xf32>, vector<1x128xf32> -> vector<1x768xf32>
    %56 = tpu.concatenate %27, %34, %41, %48, %55 in 0 : vector<1x768xf32>, vector<1x768xf32>, vector<1x768xf32>, vector<1x768xf32>, vector<1x768xf32> -> vector<5x768xf32>
    %57 = arith.truncf %56 : vector<5x768xf32> to vector<5x768xbf16>
    %c0_7 = arith.constant 0 : index
    %c0_8 = arith.constant 0 : index
    %58 = vector.load %arg4[%c0_7, %c0_8] : memref<768x512xbf16, #tpu.memory_space<vmem>>, vector<768x512xbf16>
    %cst_9 = arith.constant dense<0.000000e+00> : vector<5x512xf32>
    %59 = tpu.matmul %57, %58, %cst_9 {dimension_numbers = #tpu.dot_dimension_numbers<[1], [0], [0], [1], [0, 0, 1, 1], [], []>} : vector<5x768xbf16>, vector<768x512xbf16>, vector<5x512xf32> -> vector<5x512xf32>
    %60 = vector.extract_strided_slice %59 {offsets = [0, 0], sizes = [5, 128], strides = [1, 1]} : vector<5x512xf32> to vector<5x128xf32>
    %61 = vector.extract_strided_slice %59 {offsets = [0, 128], sizes = [5, 128], strides = [1, 1]} : vector<5x512xf32> to vector<5x128xf32>
    %62 = arith.maximumf %60, %61 : vector<5x128xf32>
    %63 = vector.extract_strided_slice %59 {offsets = [0, 256], sizes = [5, 128], strides = [1, 1]} : vector<5x512xf32> to vector<5x128xf32>
    %64 = vector.extract_strided_slice %59 {offsets = [0, 384], sizes = [5, 128], strides = [1, 1]} : vector<5x512xf32> to vector<5x128xf32>
    %65 = arith.maximumf %63, %64 : vector<5x128xf32>
    %66 = arith.maximumf %62, %65 : vector<5x128xf32>
    %c0_10 = arith.constant 0 : index
    %c0_11 = arith.constant 0 : index
    %67 = vector.load %arg5[%c0_10, %c0_11] : memref<1x128xf32, #tpu.memory_space<vmem>>, vector<1x128xf32>
    %68 = vector.broadcast %67 : vector<1x128xf32> to vector<5x128xf32>
    %69 = arith.addf %66, %68 : vector<5x128xf32>
    %cst_12 = arith.constant 0.000000e+00 : f32
    %70 = vector.broadcast %cst_12 : f32 to vector<5x128xf32>
    %71 = arith.maximumf %69, %70 : vector<5x128xf32>
    %72 = vector.extract_strided_slice %71 {offsets = [0, 0], sizes = [1, 128], strides = [1, 1]} : vector<5x128xf32> to vector<1x128xf32>
    %73 = vector.extract_strided_slice %71 {offsets = [1, 0], sizes = [1, 128], strides = [1, 1]} : vector<5x128xf32> to vector<1x128xf32>
    %74 = vector.extract_strided_slice %71 {offsets = [2, 0], sizes = [1, 128], strides = [1, 1]} : vector<5x128xf32> to vector<1x128xf32>
    %75 = vector.extract_strided_slice %71 {offsets = [3, 0], sizes = [1, 128], strides = [1, 1]} : vector<5x128xf32> to vector<1x128xf32>
    %76 = vector.extract_strided_slice %71 {offsets = [4, 0], sizes = [1, 128], strides = [1, 1]} : vector<5x128xf32> to vector<1x128xf32>
    %77 = tpu.concatenate %72, %73, %74, %75, %76 in 1 : vector<1x128xf32>, vector<1x128xf32>, vector<1x128xf32>, vector<1x128xf32>, vector<1x128xf32> -> vector<1x640xf32>
    %78 = arith.truncf %77 : vector<1x640xf32> to vector<1x640xbf16>
    %c0_13 = arith.constant 0 : index
    %c0_14 = arith.constant 0 : index
    %79 = vector.load %arg6[%c0_13, %c0_14] : memref<640x128xbf16, #tpu.memory_space<vmem>>, vector<640x128xbf16>
    %cst_15 = arith.constant dense<0.000000e+00> : vector<1x128xf32>
    %80 = tpu.matmul %78, %79, %cst_15 {dimension_numbers = #tpu.dot_dimension_numbers<[1], [0], [0], [1], [0, 0, 1, 1], [], []>} : vector<1x640xbf16>, vector<640x128xbf16>, vector<1x128xf32> -> vector<1x128xf32>
    %c0_16 = arith.constant 0 : index
    %c0_17 = arith.constant 0 : index
    %81 = vector.load %arg7[%c0_16, %c0_17] : memref<1x128xf32, #tpu.memory_space<vmem>>, vector<1x128xf32>
    %82 = arith.addf %80, %81 : vector<1x128xf32>
    %cst_18 = arith.constant 0.000000e+00 : f32
    %83 = vector.broadcast %cst_18 : f32 to vector<1x128xf32>
    %84 = arith.maximumf %82, %83 : vector<1x128xf32>
    %85 = arith.truncf %84 : vector<1x128xf32> to vector<1x128xbf16>
    %c0_19 = arith.constant 0 : index
    %c0_20 = arith.constant 0 : index
    %86 = vector.load %arg8[%c0_19, %c0_20] : memref<128x128xbf16, #tpu.memory_space<vmem>>, vector<128x128xbf16>
    %cst_21 = arith.constant dense<0.000000e+00> : vector<1x128xf32>
    %87 = tpu.matmul %85, %86, %cst_21 {dimension_numbers = #tpu.dot_dimension_numbers<[1], [0], [0], [1], [0, 0, 1, 1], [], []>} : vector<1x128xbf16>, vector<128x128xbf16>, vector<1x128xf32> -> vector<1x128xf32>
    %c0_22 = arith.constant 0 : index
    %c0_23 = arith.constant 0 : index
    %88 = vector.load %arg9[%c0_22, %c0_23] : memref<1x128xf32, #tpu.memory_space<vmem>>, vector<1x128xf32>
    %89 = arith.addf %87, %88 : vector<1x128xf32>
    %90 = vector.shape_cast %89 : vector<1x128xf32> to vector<1x1x128xf32>
    %c0_24 = arith.constant 0 : index
    %c0_25 = arith.constant 0 : index
    %c0_26 = arith.constant 0 : index
    %91 = vector.load %arg10[%c0_24, %c0_25, %c0_26] : memref<1x1x128xf32, #tpu.memory_space<vmem>>, vector<1x1x128xf32>
    tpu.vector_store %arg10[%c0_24, %c0_25, %c0_26], %90 {strides = array<i32>} : memref<1x1x128xf32, #tpu.memory_space<vmem>>, vector<1x1x128xf32>,
    return
  }
  func.func @transform_0(%arg0: i32) -> (i32, i32, i32) {
    %c0_i32 = arith.constant 0 : i32
    %c0_i32_0 = arith.constant 0 : i32
    %c0_i32_1 = arith.constant 0 : i32
    return %arg0, %c0_i32, %c0_i32_0 : i32, i32, i32
  }
  func.func @transform_1(%arg0: i32) -> (i32, i32) {
    %c0_i32 = arith.constant 0 : i32
    %c0_i32_0 = arith.constant 0 : i32
    %c0_i32_1 = arith.constant 0 : i32
    return %c0_i32, %c0_i32_0 : i32, i32
  }
  func.func @transform_2(%arg0: i32) -> (i32, i32) {
    %c0_i32 = arith.constant 0 : i32
    %c0_i32_0 = arith.constant 0 : i32
    %c0_i32_1 = arith.constant 0 : i32
    return %c0_i32, %c0_i32_0 : i32, i32
  }
  func.func @transform_3(%arg0: i32) -> (i32, i32) {
    %c0_i32 = arith.constant 0 : i32
    %c0_i32_0 = arith.constant 0 : i32
    %c0_i32_1 = arith.constant 0 : i32
    return %c0_i32, %c0_i32_0 : i32, i32
  }
  func.func @transform_4(%arg0: i32) -> (i32, i32) {
    %c0_i32 = arith.constant 0 : i32
    %c0_i32_0 = arith.constant 0 : i32
    %c0_i32_1 = arith.constant 0 : i32
    return %c0_i32, %c0_i32_0 : i32, i32
  }
  func.func @transform_5(%arg0: i32) -> (i32, i32) {
    %c0_i32 = arith.constant 0 : i32
    %c0_i32_0 = arith.constant 0 : i32
    %c0_i32_1 = arith.constant 0 : i32
    return %c0_i32, %c0_i32_0 : i32, i32
  }
  func.func @transform_6(%arg0: i32) -> (i32, i32) {
    %c0_i32 = arith.constant 0 : i32
    %c0_i32_0 = arith.constant 0 : i32
    %c0_i32_1 = arith.constant 0 : i32
    return %c0_i32, %c0_i32_0 : i32, i32
  }
  func.func @transform_7(%arg0: i32) -> (i32, i32) {
    %c0_i32 = arith.constant 0 : i32
    %c0_i32_0 = arith.constant 0 : i32
    %c0_i32_1 = arith.constant 0 : i32
    return %c0_i32, %c0_i32_0 : i32, i32
  }
  func.func @transform_8(%arg0: i32) -> (i32, i32) {
    %c0_i32 = arith.constant 0 : i32
    %c0_i32_0 = arith.constant 0 : i32
    %c0_i32_1 = arith.constant 0 : i32
    return %c0_i32, %c0_i32_0 : i32, i32
  }
  func.func @transform_9(%arg0: i32) -> (i32, i32, i32) {
    %c0_i32 = arith.constant 0 : i32
    %c0_i32_0 = arith.constant 0 : i32
    %c0_i32_1 = arith.constant 0 : i32
    return %arg0, %c0_i32, %c0_i32_0 : i32, i32, i32
  }
}

</mosaic_0001>

<bundles_post_ra>
// kernel: forward.1
= control target key start
LH: loop header
LB: loop body
LE: loop exit
PB: predicated region body
PF: predicated region fallthrough
CT: control target
= control target key end

     0   :  { %14 = vsyncpa [#allocation3], 0  ;;  %s6307_s0 = inlined_call_operand.vmem [shape: f32[2,16,192], index: 0, kind: input, shape index: {}]   ;;  %s6308_s1 = inlined_call_operand.vmem [shape: bf16[576,512], index: 1, kind: input, shape index: {}]   ;;  %s6309_s2 = inlined_call_operand.vmem [shape: f32[1,128], index: 2, kind: input, shape index: {}]   ;;  %s6310_s3 = inlined_call_operand.vmem [shape: bf16[768,512], index: 3, kind: input, shape index: {}]   ;;  %s6311_s4 = inlined_call_operand.vmem [shape: f32[1,128], index: 4, kind: input, shape index: {}]   ;;  %s6312_s5 = inlined_call_operand.vmem [shape: bf16[640,128], index: 5, kind: input, shape index: {}]   ;;  %s6313_s6 = inlined_call_operand.vmem [shape: f32[1,128], index: 6, kind: input, shape index: {}]   ;;  %s6314_s7 = inlined_call_operand.vmem [shape: bf16[128,128], index: 7, kind: input, shape index: {}]   ;;  %s6315_s8 = inlined_call_operand.vmem [shape: f32[1,128], index: 8, kind: input, shape index: {}]   ;;  %s6316_s9 = inlined_call_operand.hbm [shape: f32[2,1,128], index: 9, kind: output, shape index: {}]  }
   0x1   :  { %16 = vsyncpa [#allocation3 + $0x1], 0  ;;  %s4913_s30 = smov 0   ;;  %s4915_s10 = smov 0  }
   0x2   :  { %s4917_s11 = smov 0   ;;  %s4919_s12 = smov 0  }
   0x3 LB: > { %s4934_s13 = sadd.s32 4294967295, %s4856_s12   ;;  %s3654_s14 = sadd.s32 4294967294, %s4856_s12   ;;  %s4856_s12 = sphi %s4919_s12, %s6322_s12   ;;  %s4852_s11 = sphi %s4917_s11, %s6321_s11   ;;  %s4848_s10 = sphi %s4915_s10, %s6320_s10   ;;  %s4844_s30 = sphi %s4913_s30, %s6319_s30  }
   0x4   : > { %s4938_s15 = sadd.s32 1, %s4856_s12   ;;  %s223_s16 = sadd.s32 1, %s4852_s11 }
   0x5   : > { %s220_s17 = ssub.s32 %s4856_s12, %s4938_s15  ;;  %p233_p0 = scmp.ne.s32.totalorder %s4852_s11, %s4848_s10 }
   0x6   : > { %p221_p1 = scmp.eq.s32.totalorder %s220_s17, 0  ;;  %p234_p2 = scmp.eq.s32.totalorder %s4934_s13, 1 }
   0x7   : > { %p239_p3 = scmp.ne.s32.totalorder %s4848_s10, %s4844_s30  ;;  %p240_p4 = scmp.eq.s32.totalorder %s3654_s14, 1 }
   0x8   : > { %s4949_s18 = scalar_select %p221_p1, %s4852_s11, %s223_s16  }
   0x9   : > { %p4951_p5 = por %p234_p2, %p233_p0  ;;  %p4955_p6 = por %p240_p4, %p239_p3 }
   0xa   : > { %p3657_p7 = scmp.ge.s32.totalorder %s4856_s12, 1  ;;  %p290_p8 = scmp.lt.s32.totalorder %s4856_s12, 3 }
   0xc   : > { %p291_p9 = pnand %p3657_p7, %p290_p8 }
   0xd   : > { %p325_p10 = scmp.lt.s32.totalorder (!%p291_p9), %s4934_s13, 1  ;;  %v4240_v0 = vld [vmem:[%s6308_s1 + $0x4] ss:$16 sps:$4 sm:$0xff] (!%p291_p9)   ;;  %v4242_v1 = vld [vmem:[%s6308_s1 + $0xc] ss:$16 sps:$4 sm:$0xff] (!%p291_p9)   ;;  %vm339_vm0 = vcmask (!%p291_p9), 1046528  }
   0xe   : > { %294 = sbr.rel (%p291_p9) target bundleno = 1297 (0x511), region = 56  ;;  %v4244_v2 = vld [vmem:[%s6308_s1] ss:$16 sps:$4 sm:$0xff] (!%p291_p9)   ;;  %v4245_v3 = vld [vmem:[%s6308_s1 + $0x8] ss:$16 sps:$4 sm:$0xff] (!%p291_p9)   ;;  %1246 = vmatprep.subr.bf16.mxu0 (!%p291_p9), %v4240_v0  ;;  %1375 = vmatprep.subr.bf16.mxu1 (!%p291_p9), %v4242_v1  ;;  %s4858_s21 = smov (!%p291_p9), 64  }
   0xf   : > { %v4246_v4 = vld [vmem:[%s6308_s1 + $0x24] ss:$16 sps:$4 sm:$0xff] (!%p291_p9)   ;;  %1247 = vmatpush1.bf16.msra.mxu0 (!%p291_p9), %v4244_v2  ;;  %1376 = vmatpush1.bf16.msra.mxu1 (!%p291_p9), %v4245_v3  ;;  %v4248_v5 = vld [vmem:[%s6308_s1 + $0x2c] ss:$16 sps:$4 sm:$0xff] (!%p291_p9)   ;;  %v4250_v6 = vld [vmem:[%s6308_s1 + $0x20] ss:$16 sps:$4 sm:$0xff] (!%p291_p9)  }
  0x10   : > { %1248 = vmatprep.subr.bf16.mxu0 (!%p291_p9), %v4246_v4  ;;  %v4251_v7 = vld [vmem:[%s6308_s1 + $0x28] ss:$16 sps:$4 sm:$0xff] (!%p291_p9)   ;;  %1377 = vmatprep.subr.bf16.mxu1 (!%p291_p9), %v4248_v5  ;;  %v4252_v15 = vld [vmem:[%s6308_s1 + $0x44] ss:$16 sps:$4 sm:$0xff] (!%p291_p9)   ;;  %v4254_v18 = vld [vmem:[%s6308_s1 + $0x4c] ss:$16 sps:$4 sm:$0xff] (!%p291_p9)  }
  0x11   : > { %v4256_v20 = vld [vmem:[%s6308_s1 + $0x40] ss:$16 sps:$4 sm:$0xff] (!%p291_p9)   ;;  %v4257_v21 = vld [vmem:[%s6308_s1 + $0x48] ss:$16 sps:$4 sm:$0xff] (!%p291_p9)   ;;  %v4258_v24 = vld [vmem:[%s6308_s1 + $0x64] ss:$16 sps:$4 sm:$0xff] (!%p291_p9)  }
  0x12   : > { %v4260_v25 = vld [vmem:[%s6308_s1 + $0x6c] ss:$16 sps:$4 sm:$0xff] (!%p291_p9)   ;;  %v4262_v26 = vld [vmem:[%s6308_s1 + $0x60] ss:$16 sps:$4 sm:$0xff] (!%p291_p9)   ;;  %v4263_v28 = vld [vmem:[%s6308_s1 + $0x68] ss:$16 sps:$4 sm:$0xff] (!%p291_p9)  }
  0x13   : > { %1249 = vmatpush1.bf16.msra.mxu0 (!%p291_p9), %v4250_v6  ;;  %1378 = vmatpush1.bf16.msra.mxu1 (!%p291_p9), %v4251_v7  ;;  %v4264_v29 = vld [vmem:[%s6308_s1 + $0x84] ss:$16 sps:$4 sm:$0xff] (!%p291_p9)   ;;  %v4266_v30 = vld [vmem:[%s6308_s1 + $0x8c] ss:$16 sps:$4 sm:$0xff] (!%p291_p9)   ;;  %v4268_v31 = vld [vmem:[%s6308_s1 + $0x80] ss:$16 sps:$4 sm:$0xff] (!%p291_p9)  }
  0x14   : > { %1250 = vmatprep.subr.bf16.mxu0 (!%p291_p9), %v4252_v15  ;;  %1379 = vmatprep.subr.bf16.mxu1 (!%p291_p9), %v4254_v18  ;;  %v4269_v32 = vld [vmem:[%s6308_s1 + $0x88] ss:$16 sps:$4 sm:$0xff] (!%p291_p9)   ;;  %v4270_v33 = vld [vmem:[%s6308_s1 + $0xa4] ss:$16 sps:$4 sm:$0xff] (!%p291_p9)   ;;  %v4272_v34 = vld [vmem:[%s6308_s1 + $0xac] ss:$16 sps:$4 sm:$0xff] (!%p291_p9)  }
  0x15   : > { %s326_s25 = scalar_select %p325_p10, %s4934_s13, 1  ;;  %v4274_v35 = vld [vmem:[%s6308_s1 + $0xa0] ss:$16 sps:$4 sm:$0xff]   ;;  %v4275_v36 = vld [vmem:[%s6308_s1 + $0xa8] ss:$16 sps:$4 sm:$0xff]   ;;  %vm361_vm1 = vcmask 1045504  }
  0x16   : > { %v4276_v37 = vld [vmem:[%s6308_s1 + $0xc4] ss:$16 sps:$4 sm:$0xff]   ;;  %v4278_v38 = vld [vmem:[%s6308_s1 + $0xcc] ss:$16 sps:$4 sm:$0xff]   ;;  %v4280_v39 = vld [vmem:[%s6308_s1 + $0xc0] ss:$16 sps:$4 sm:$0xff]  }
  0x17   : > { %s4052_s17 = sshll.u32 %s326_s25, 5  ;;  %1251 = vmatpush1.bf16.msra.mxu0 %v4256_v20  ;;  %1380 = vmatpush1.bf16.msra.mxu1 %v4257_v21  ;;  %v4281_v40 = vld [vmem:[%s6308_s1 + $0xc8] ss:$16 sps:$4 sm:$0xff]   ;;  %v4282_v41 = vld [vmem:[%s6308_s1 + $0xe4] ss:$16 sps:$4 sm:$0xff]   ;;  %vm354_vm2 = vcmask 523264  }
  0x18   : > { %s4987_s28 = scalar_lea.vmem %s6307_s0, %s4052_s17  ;;  %1252 = vmatprep.subr.bf16.mxu0 %v4258_v24  ;;  %1381 = vmatprep.subr.bf16.mxu1 %v4260_v25  ;;  %v4284_v42 = vld [vmem:[%s6308_s1 + $0xec] ss:$16 sps:$4 sm:$0xff]   ;;  %v4286_v43 = vld [vmem:[%s6308_s1 + $0xe0] ss:$16 sps:$4 sm:$0xff]   ;;  %v4287_v44 = vld [vmem:[%s6308_s1 + $0xe8] ss:$16 sps:$4 sm:$0xff]  }
  0x19   : > { %v4993_v8 = vld [vmem:[%s4987_s28] sm:$0xff]  ;;  %v4996_v9 = vld [vmem:[%s4987_s28 + $0x10] sm:$0xff]  ;;  %v4999_v10 = vld [vmem:[%s4987_s28 + $0x8] sm:$0xff]  ;;  %vm1579_vm3 = vcmask 1040384   ;;  %vm1586_vm4 = vcmask 1041408   ;;  %vm1593_vm5 = vcmask 1042432  }
  0x1a   : > { %v340_v11 = vrot.slane %v4993_v8, 1  ;;  %v341_v12 = vrot.slane %v4996_v9, 1  ;;  %v5004_v13 = vld [vmem:[%s4987_s28 + $0x18] sm:$0xff]  ;;  %v343_v14 = vrot.slane %v4999_v10, 1  ;;  %v5012_v16 = vpack.c.bf16 %v4996_v9, %v4993_v8  ;;  %v4288_v45 = vld [vmem:[%s6308_s1 + $0x104] ss:$16 sps:$4 sm:$0xff]  }
  0x1b   : > { %v344_v17 = vrot.slane %v5004_v13, 1  ;;  %1253 = vmatpush1.bf16.msra.mxu0 %v4262_v26  ;;  %1382 = vmatpush1.bf16.msra.mxu1 %v4263_v28  ;;  %v4290_v46 = vld [vmem:[%s6308_s1 + $0x10c] ss:$16 sps:$4 sm:$0xff]   ;;  %v4292_v47 = vld [vmem:[%s6308_s1 + $0x100] ss:$16 sps:$4 sm:$0xff]   ;;  %v362_v20 = vrot.slane %v4993_v8, 2 }
  0x1c   : > { %v342_v19 = vsel %vm339_vm0, %v340_v11, %v341_v12  ;;  %1254 = vmatprep.subr.bf16.mxu0 %v4264_v29  ;;  %1383 = vmatprep.subr.bf16.mxu1 %v4266_v30  ;;  %v4293_v48 = vld [vmem:[%s6308_s1 + $0x108] ss:$16 sps:$4 sm:$0xff]   ;;  %v4294_v49 = vld [vmem:[%s6308_s1 + $0x124] ss:$16 sps:$4 sm:$0xff]   ;;  %v4296_v50 = vld [vmem:[%s6308_s1 + $0x12c] ss:$16 sps:$4 sm:$0xff]  }
  0x1d   : > { %v4230_v22 = vpack.i.bf16 %v341_v12, %v342_v19  ;;  %v345_v23 = vsel %vm339_vm0, %v343_v14, %v344_v17  ;;  %v4298_v51 = vld [vmem:[%s6308_s1 + $0x120] ss:$16 sps:$4 sm:$0xff]   ;;  %v4299_v52 = vld [vmem:[%s6308_s1 + $0x128] ss:$16 sps:$4 sm:$0xff]   ;;  %v4300_v53 = vld [vmem:[%s6308_s1 + $0x144] ss:$16 sps:$4 sm:$0xff]  }
  0x1e   : > { %v4235_v27 = vpack.i.bf16 %v344_v17, %v345_v23  ;;  %v4302_v54 = vld [vmem:[%s6308_s1 + $0x14c] ss:$16 sps:$4 sm:$0xff]   ;;  %v4304_v55 = vld [vmem:[%s6308_s1 + $0x140] ss:$16 sps:$4 sm:$0xff]   ;;  %v4305_v56 = vld [vmem:[%s6308_s1 + $0x148] ss:$16 sps:$4 sm:$0xff]  }
  0x1f   : > { %4231 = vrot.lane.b32.xlu0 %v4230_v22, %s4858_s21  ;;  %1255 = vmatpush1.bf16.msra.mxu0 %v4268_v31  ;;  %v4306_v57 = vld [vmem:[%s6308_s1 + $0x164] ss:$16 sps:$4 sm:$0xff]   ;;  %v4308_v58 = vld [vmem:[%s6308_s1 + $0x16c] ss:$16 sps:$4 sm:$0xff]   ;;  %v4310_v59 = vld [vmem:[%s6308_s1 + $0x160] ss:$16 sps:$4 sm:$0xff]  }
  0x20   : > { %1384 = vmatpush1.bf16.msra.mxu1 %v4269_v32  ;;  %1256 = vmatprep.subr.bf16.mxu0 %v4270_v33  ;;  %v4311_v60 = vld [vmem:[%s6308_s1 + $0x168] ss:$16 sps:$4 sm:$0xff]   ;;  %v4312_v61 = vld [vmem:[%s6308_s1 + $0x184] ss:$16 sps:$4 sm:$0xff]   ;;  %v4314_v62 = vld [vmem:[%s6308_s1 + $0x18c] ss:$16 sps:$4 sm:$0xff]  }
  0x21   : > { %1385 = vmatprep.subr.bf16.mxu1 %v4272_v34  ;;  %v4316_v63 = vld [vmem:[%s6308_s1 + $0x180] ss:$16 sps:$4 sm:$0xff]   ;;  %v4317_v0 = vld [vmem:[%s6308_s1 + $0x188] ss:$16 sps:$4 sm:$0xff]   ;;  %v4318_v1 = vld [vmem:[%s6308_s1 + $0x1a4] ss:$16 sps:$4 sm:$0xff]  }
  0x22   : > { %v4320_v2 = vld [vmem:[%s6308_s1 + $0x1ac] ss:$16 sps:$4 sm:$0xff]   ;;  %v4322_v3 = vld [vmem:[%s6308_s1 + $0x1a0] ss:$16 sps:$4 sm:$0xff]   ;;  %v4323_v4 = vld [vmem:[%s6308_s1 + $0x1a8] ss:$16 sps:$4 sm:$0xff]  }
  0x23   : > { %4236 = vrot.lane.b32.xlu0 %v4235_v27, %s4858_s21  ;;  %1257 = vmatpush1.bf16.msra.mxu0 %v4274_v35  ;;  %v4324_v5 = vld [vmem:[%s6308_s1 + $0x1c4] ss:$16 sps:$4 sm:$0xff]   ;;  %v4326_v6 = vld [vmem:[%s6308_s1 + $0x1cc] ss:$16 sps:$4 sm:$0xff]   ;;  %v4328_v7 = vld [vmem:[%s6308_s1 + $0x1c0] ss:$16 sps:$4 sm:$0xff]  }
  0x24   : > { %1386 = vmatpush1.bf16.msra.mxu1 %v4275_v36  ;;  %1258 = vmatprep.subr.bf16.mxu0 %v4276_v37  ;;  %v4329_v11 = vld [vmem:[%s6308_s1 + $0x1c8] ss:$16 sps:$4 sm:$0xff]   ;;  %v4330_v12 = vld [vmem:[%s6308_s1 + $0x1e4] ss:$16 sps:$4 sm:$0xff]   ;;  %v4332_v14 = vld [vmem:[%s6308_s1 + $0x1ec] ss:$16 sps:$4 sm:$0xff]  }
  0x25   : > { %1387 = vmatprep.subr.bf16.mxu1 %v4278_v38  ;;  %v4334_v15 = vld [vmem:[%s6308_s1 + $0x1e0] ss:$16 sps:$4 sm:$0xff]   ;;  %v4335_v17 = vld [vmem:[%s6308_s1 + $0x1e8] ss:$16 sps:$4 sm:$0xff]   ;;  %v4338_v18 = vld [vmem:[%s6308_s1 + $0x204] ss:$16 sps:$4 sm:$0xff]  }
  0x26   : > { %v4341_v19 = vld [vmem:[%s6308_s1 + $0x20c] ss:$16 sps:$4 sm:$0xff]   ;;  %v363_v21 = vrot.slane %v4996_v9, 2  ;;  %v4336_v27 = vld [vmem:[%s6308_s1 + $0x200] ss:$16 sps:$4 sm:$0xff]   ;;  %vm1600_vm6 = vcmask 1043456  }
  0x27   : > { %1259 = vmatpush1.bf16.msra.mxu0 %v4280_v39  ;;  %v4339_v8 = vld [vmem:[%s6308_s1 + $0x208] ss:$16 sps:$4 sm:$0xff]   ;;  %v4344_v29 = vld [vmem:[%s6308_s1 + $0x224] ss:$16 sps:$4 sm:$0xff]   ;;  %v4347_v30 = vld [vmem:[%s6308_s1 + $0x22c] ss:$16 sps:$4 sm:$0xff]  }
  0x28   : > { %1388 = vmatpush1.bf16.msra.mxu1 %v4281_v40  ;;  %1260 = vmatprep.subr.bf16.mxu0 %v4282_v41  ;;  %v364_v22 = vsel %vm361_vm1, %v362_v20, %v363_v21  ;;  %v4350_v37 = vld [vmem:[%s6308_s1 + $0x244] ss:$16 sps:$4 sm:$0xff]   ;;  %v4353_v38 = vld [vmem:[%s6308_s1 + $0x24c] ss:$16 sps:$4 sm:$0xff]   ;;  %v4348_v40 = vld [vmem:[%s6308_s1 + $0x240] ss:$16 sps:$4 sm:$0xff]  }
  0x29   : > { %1389 = vmatprep.subr.bf16.mxu1 %v4284_v42  ;;  %v377_v23 = vpack.c.bf16 %v363_v21, %v364_v22  ;;  %v4356_v41 = vld [vmem:[%s6308_s1 + $0x264] ss:$16 sps:$4 sm:$0xff]   ;;  %v4359_v42 = vld [vmem:[%s6308_s1 + $0x26c] ss:$16 sps:$4 sm:$0xff]   ;;  %vm4861_vm7 = vmmov 0   ;;  %s323_s29 = sand.u32 1, %s4848_s10  }
  0x2a   : > { %v5346_v20 = vld [vmem:[%s4987_s28 + $0x18] sm:$0xff]  ;;  %v5350_v22 = vld [vmem:[%s4987_s28 + $0x8] sm:$0xff]  ;;  %s4049_s16 = sshll.u32 %s4934_s13, 4  ;;  %s324_s17 = scalar_lea.vmem [#allocation2], %s323_s29 }
  0x2b   : > { %1261 = vmatpush1.bf16.msra.mxu0 %v4286_v43  ;;  %v4354_v43 = vld [vmem:[%s6308_s1 + $0x260] ss:$16 sps:$4 sm:$0xff]   ;;  %v366_v21 = vrot.slane %v5346_v20, 2  ;;  %v4495_v20 = vld [vmem:[%s6310_s3 + $0xc8] ss:$16 sps:$4 sm:$0xff]   ;;  %s3599_s22 = sshll.u32 %s324_s17, 4  ;;  %s6265_s26 = scalar_lea.hbm %s6316_s9, %s4049_s16  ;;  %s6267_s22 = int_to_ptr.vmem [resolvable:$true] %s3599_s22 }
  0x2c   : > { %1390 = vmatpush1.bf16.msra.mxu1 %v4287_v44  ;;  %1262 = vmatprep.subr.bf16.mxu0 %v4288_v45  ;;  %v4357_v44 = vld [vmem:[%s6308_s1 + $0x268] ss:$16 sps:$4 sm:$0xff]   ;;  %v4362_v45 = vld [vmem:[%s6308_s1 + $0x284] ss:$16 sps:$4 sm:$0xff]   ;;  %s3587_s21 = scalar_lea.sflag [#allocation3], %s323_s29  ;;  %s4794_s13 = scalar_lea.vmem %s6267_s22, 16 }
  0x2d   : > { %1391 = vmatprep.subr.bf16.mxu1 %v4290_v46  ;;  %v4365_v46 = vld [vmem:[%s6308_s1 + $0x28c] ss:$16 sps:$4 sm:$0xff]   ;;  %p4795_p11 = scmp.ne.s32.totalorder %s6267_s22, %s4794_s13  ;;  %s4862_s27 = smov [#allocation2]  }
  0x2e   : > { %s4798_s25 = sshll.u32 %s4862_s27, 4  ;;  %s4799_s25 = int_to_ptr.vmem [resolvable:$false] %s4798_s25 }
  0x2f   : > { %1263 = vmatpush1.bf16.msra.mxu0 %v4292_v47  ;;  %v4360_v47 = vld [vmem:[%s6308_s1 + $0x280] ss:$16 sps:$4 sm:$0xff]   ;;  %p4796_p12 = pnand %p4795_p11, %p4951_p5  ;;  %s4800_s14 = scalar_lea.vmem %s4799_s25, 32 }
  0x30   : > { %1392 = vmatpush1.bf16.msra.mxu1 %v4293_v48  ;;  %1264 = vmatprep.subr.bf16.mxu0 %v4294_v49  ;;  %v4363_v48 = vld [vmem:[%s6308_s1 + $0x288] ss:$16 sps:$4 sm:$0xff]   ;;  %v4368_v49 = vld [vmem:[%s6308_s1 + $0x2a4] ss:$16 sps:$4 sm:$0xff]   ;;  %p4801_p0 = scmp.lt.s32.totalorder %s6267_s22, %s4799_s25  ;;  %p4802_p1 = scmp.lt.s32.totalorder %s4800_s14, %s4794_s13 }
  0x31   : > { %1393 = vmatprep.subr.bf16.mxu1 %v4296_v50  ;;  %v4371_v50 = vld [vmem:[%s6308_s1 + $0x2ac] ss:$16 sps:$4 sm:$0xff]   ;;  %p4797_p13 = pneg %p4796_p12 }
  0x32   : > { %p4803_p2 = por %p4802_p1, %p4801_p0 }
  0x33   : > { %1265 = vmatpush1.bf16.msra.mxu0 %v4298_v51  ;;  %v4366_v51 = vld [vmem:[%s6308_s1 + $0x2a0] ss:$16 sps:$4 sm:$0xff]  }
  0x34   : > { %1394 = vmatpush1.bf16.msra.mxu1 %v4299_v52  ;;  %1266 = vmatprep.subr.bf16.mxu0 %v4300_v53  ;;  %v4369_v52 = vld [vmem:[%s6308_s1 + $0x2a8] ss:$16 sps:$4 sm:$0xff]   ;;  %v4374_v53 = vld [vmem:[%s6308_s1 + $0x2c4] ss:$16 sps:$4 sm:$0xff]   ;;  %p4804_p3 = pnand %p4803_p2, %p4797_p13 }
  0x35   : > { %1395 = vmatprep.subr.bf16.mxu1 %v4302_v54  ;;  %v4377_v54 = vld [vmem:[%s6308_s1 + $0x2cc] ss:$16 sps:$4 sm:$0xff]  }
  0x37   : > { %1267 = vmatpush1.bf16.msra.mxu0 %v4304_v55  ;;  %v4372_v55 = vld [vmem:[%s6308_s1 + $0x2c0] ss:$16 sps:$4 sm:$0xff]  }
  0x38   : > { %1396 = vmatpush1.bf16.msra.mxu1 %v4305_v56  ;;  %1268 = vmatprep.subr.bf16.mxu0 %v4306_v57  ;;  %v4375_v56 = vld [vmem:[%s6308_s1 + $0x2c8] ss:$16 sps:$4 sm:$0xff]   ;;  %v4380_v57 = vld [vmem:[%s6308_s1 + $0x2e4] ss:$16 sps:$4 sm:$0xff]  }
  0x39   : > { %1397 = vmatprep.subr.bf16.mxu1 %v4308_v58  ;;  %v4383_v58 = vld [vmem:[%s6308_s1 + $0x2ec] ss:$16 sps:$4 sm:$0xff]  }
  0x3b   : > { %1269 = vmatpush1.bf16.msra.mxu0 %v4310_v59  ;;  %v4378_v59 = vld [vmem:[%s6308_s1 + $0x2e0] ss:$16 sps:$4 sm:$0xff]  }
  0x3c   : > { %1398 = vmatpush1.bf16.msra.mxu1 %v4311_v60  ;;  %1270 = vmatprep.subr.bf16.mxu0 %v4312_v61  ;;  %v4381_v60 = vld [vmem:[%s6308_s1 + $0x2e8] ss:$16 sps:$4 sm:$0xff]   ;;  %v4386_v61 = vld [vmem:[%s6308_s1 + $0x304] ss:$16 sps:$4 sm:$0xff]  }
  0x3d   : > { %1399 = vmatprep.subr.bf16.mxu1 %v4314_v62  ;;  %v4389_v62 = vld [vmem:[%s6308_s1 + $0x30c] ss:$16 sps:$4 sm:$0xff]  }
  0x3f   : > { %1271 = vmatpush1.bf16.msra.mxu0 %v4316_v63  ;;  %v4384_v63 = vld [vmem:[%s6308_s1 + $0x300] ss:$16 sps:$4 sm:$0xff]  }
  0x40   : > { %1400 = vmatpush1.bf16.msra.mxu1 %v4317_v0  ;;  %1272 = vmatprep.subr.bf16.mxu0 %v4318_v1  ;;  %v4387_v0 = vld [vmem:[%s6308_s1 + $0x308] ss:$16 sps:$4 sm:$0xff]   ;;  %v4392_v1 = vld [vmem:[%s6308_s1 + $0x324] ss:$16 sps:$4 sm:$0xff]  }
  0x41   : > { %1401 = vmatprep.subr.bf16.mxu1 %v4320_v2  ;;  %v4395_v2 = vld [vmem:[%s6308_s1 + $0x32c] ss:$16 sps:$4 sm:$0xff]  }
  0x43   : > { %1273 = vmatpush1.bf16.msra.mxu0 %v4322_v3  ;;  %v4390_v3 = vld [vmem:[%s6308_s1 + $0x320] ss:$16 sps:$4 sm:$0xff]  }
  0x44   : > { %1402 = vmatpush1.bf16.msra.mxu1 %v4323_v4  ;;  %1274 = vmatprep.subr.bf16.mxu0 %v4324_v5  ;;  %v4393_v4 = vld [vmem:[%s6308_s1 + $0x328] ss:$16 sps:$4 sm:$0xff]   ;;  %v4398_v5 = vld [vmem:[%s6308_s1 + $0x344] ss:$16 sps:$4 sm:$0xff]  }
  0x45   : > { %1403 = vmatprep.subr.bf16.mxu1 %v4326_v6  ;;  %v4401_v6 = vld [vmem:[%s6308_s1 + $0x34c] ss:$16 sps:$4 sm:$0xff]  }
  0x47   : > { %1275 = vmatpush1.bf16.msra.mxu0 %v4328_v7  ;;  %v4396_v7 = vld [vmem:[%s6308_s1 + $0x340] ss:$16 sps:$4 sm:$0xff]  }
  0x48   : > { %1404 = vmatpush1.bf16.msra.mxu1 %v4329_v11  ;;  %1276 = vmatprep.subr.bf16.mxu0 %v4330_v12  ;;  %v4399_v11 = vld [vmem:[%s6308_s1 + $0x348] ss:$16 sps:$4 sm:$0xff]   ;;  %v4404_v12 = vld [vmem:[%s6308_s1 + $0x364] ss:$16 sps:$4 sm:$0xff]  }
  0x49   : > { %1405 = vmatprep.subr.bf16.mxu1 %v4332_v14  ;;  %v4407_v14 = vld [vmem:[%s6308_s1 + $0x36c] ss:$16 sps:$4 sm:$0xff]  }
  0x4b   : > { %1277 = vmatpush1.bf16.msra.mxu0 %v4334_v15  ;;  %v4402_v15 = vld [vmem:[%s6308_s1 + $0x360] ss:$16 sps:$4 sm:$0xff]  }
  0x4c   : > { %1406 = vmatpush1.bf16.msra.mxu1 %v4335_v17  ;;  %1289 = vmatprep.subr.bf16.mxu0 %v4338_v18  ;;  %v4405_v17 = vld [vmem:[%s6308_s1 + $0x368] ss:$16 sps:$4 sm:$0xff]   ;;  %v4410_v18 = vld [vmem:[%s6308_s1 + $0x384] ss:$16 sps:$4 sm:$0xff]  }
  0x4d   : > { %1418 = vmatprep.subr.bf16.mxu1 %v4341_v19  ;;  %v4413_v19 = vld [vmem:[%s6308_s1 + $0x38c] ss:$16 sps:$4 sm:$0xff]  }
  0x91   : > { %v4232_v24 = vpop.permute.xlu0 %4231 }
  0x92   : > { %v4234_v25 = vunpack.i.h.bf16 %v4232_v24  ;;  %v4233_v26 = vunpack.i.l.bf16 %v4232_v24  ;;  %v4408_v24 = vld [vmem:[%s6308_s1 + $0x380] ss:$16 sps:$4 sm:$0xff]  }
  0x94   : > { %v372_v9 = vsel %vm354_vm2, %v4999_v10, %v4233_v26  ;;  %v373_v28 = vsel %vm354_vm2, %v5004_v13, %v4234_v25  ;;  %v4342_v10 = vld [vmem:[%s6308_s1 + $0x220] ss:$16 sps:$4 sm:$0xff]   ;;  %v4345_v13 = vld [vmem:[%s6308_s1 + $0x228] ss:$16 sps:$4 sm:$0xff]  }
  0x95   : > { %v4237_v31 = vpop.permute.xlu0 %4236  ;;  %v375_v32 = vpack.c.bf16 %v373_v28, %v372_v9  ;;  %v4417_v9 = vld [vmem:[%s6308_s1 + $0x3a8] ss:$16 sps:$4 sm:$0xff]   ;;  %v4422_v28 = vld [vmem:[%s6308_s1 + $0x3c4] ss:$16 sps:$4 sm:$0xff]  }
  0x96   : > { %v4239_v33 = vunpack.i.h.bf16 %v4237_v31  ;;  %v4238_v34 = vunpack.i.l.bf16 %v4237_v31  ;;  %v4423_v31 = vld [vmem:[%s6308_s1 + $0x3c8] ss:$16 sps:$4 sm:$0xff]  }
  0x97   : > { %1278 = vmatprep.mubr.bf16.mxu0 %v375_v32  ;;  %1407 = vmatprep.mubr.bf16.mxu1 %v375_v32  ;;  %v4428_v32 = vld [vmem:[%s6308_s1 + $0x3e4] ss:$16 sps:$4 sm:$0xff]  }
  0x98   : > { %v355_v35 = vsel %vm354_vm2, %v4233_v26, %v4238_v34  ;;  %v356_v36 = vsel %vm354_vm2, %v4234_v25, %v4239_v33  ;;  %1279 = vmatmul.mubr.bf16.vlgmr.msra.gmra.mrb[0].mxu0 %v5012_v16  ;;  %1408 = vmatmul.mubr.bf16.vlgmr.msra.gmra.mrb[0].mxu1 %v5012_v16  ;;  %v4351_v16 = vld [vmem:[%s6308_s1 + $0x248] ss:$16 sps:$4 sm:$0xff]   ;;  %v4416_v26 = vld [vmem:[%s6308_s1 + $0x3a4] ss:$16 sps:$4 sm:$0xff]   ;;  %v4431_v33 = vld [vmem:[%s6308_s1 + $0x3ec] ss:$16 sps:$4 sm:$0xff]  }
  0x99   : > { %v5223_v39 = vpack.c.bf16 %v356_v36, %v355_v35  ;;  %1290 = vmatpush1.bf16.msra.mxu0 %v4336_v27  ;;  %1419 = vmatpush1.bf16.msra.mxu1 %v4339_v8  ;;  %v4411_v25 = vld [vmem:[%s6308_s1 + $0x388] ss:$16 sps:$4 sm:$0xff]   ;;  %v4419_v27 = vld [vmem:[%s6308_s1 + $0x3ac] ss:$16 sps:$4 sm:$0xff]   ;;  %v4414_v8 = vld [vmem:[%s6308_s1 + $0x3a0] ss:$16 sps:$4 sm:$0xff]  }
  0x9a   : > { %1291 = vmatprep.subr.bf16.mxu0 %v4344_v29  ;;  %1420 = vmatprep.subr.bf16.mxu1 %v4347_v30  ;;  %v4425_v29 = vld [vmem:[%s6308_s1 + $0x3cc] ss:$16 sps:$4 sm:$0xff]   ;;  %v4420_v30 = vld [vmem:[%s6308_s1 + $0x3c0] ss:$16 sps:$4 sm:$0xff]  }
  0x9b   : > { %1321 = vmatprep.mubr.bf16.mxu0 %v377_v23  ;;  %1450 = vmatprep.mubr.bf16.mxu1 %v377_v23  ;;  %v365_v23 = vrot.slane %v5350_v22, 2  ;;  %v4426_v34 = vld [vmem:[%s6308_s1 + $0x3e0] ss:$16 sps:$4 sm:$0xff]   ;;  %v4437_v35 = vld [vmem:[%s6308_s1 + $0x40c] ss:$16 sps:$4 sm:$0xff]  }
  0x9c   : > { %v4432_v36 = vld [vmem:[%s6308_s1 + $0x400] ss:$16 sps:$4 sm:$0xff]   ;;  %v4503_v22 = vld [vmem:[%s6310_s3 + $0xec] ss:$16 sps:$4 sm:$0xff]  }
  0x9d   : > { %1292 = vmatpush1.bf16.msra.mxu0 %v4342_v10  ;;  %1421 = vmatpush1.bf16.msra.mxu1 %v4345_v13  ;;  %v4429_v10 = vld [vmem:[%s6308_s1 + $0x3e8] ss:$16 sps:$4 sm:$0xff]   ;;  %v4434_v13 = vld [vmem:[%s6308_s1 + $0x404] ss:$16 sps:$4 sm:$0xff]  }
  0x9e   : > { %1293 = vmatprep.subr.bf16.mxu0 %v4350_v37  ;;  %1422 = vmatprep.subr.bf16.mxu1 %v4353_v38  ;;  %v4435_v37 = vld [vmem:[%s6308_s1 + $0x408] ss:$16 sps:$4 sm:$0xff]   ;;  %v4440_v38 = vld [vmem:[%s6308_s1 + $0x424] ss:$16 sps:$4 sm:$0xff]  }
  0xa1   : > { %1294 = vmatpush1.bf16.msra.mxu0 %v4348_v40  ;;  %1423 = vmatpush1.bf16.msra.mxu1 %v4351_v16  ;;  %v4443_v40 = vld [vmem:[%s6308_s1 + $0x42c] ss:$16 sps:$4 sm:$0xff]   ;;  %v4438_v16 = vld [vmem:[%s6308_s1 + $0x420] ss:$16 sps:$4 sm:$0xff]  }
  0xa2   : > { %1295 = vmatprep.subr.bf16.mxu0 %v4356_v41  ;;  %1424 = vmatprep.subr.bf16.mxu1 %v4359_v42  ;;  %v4441_v41 = vld [vmem:[%s6308_s1 + $0x428] ss:$16 sps:$4 sm:$0xff]   ;;  %v4446_v42 = vld [vmem:[%s6308_s1 + $0x444] ss:$16 sps:$4 sm:$0xff]  }
  0xa5   : > { %1296 = vmatpush1.bf16.msra.mxu0 %v4354_v43  ;;  %1425 = vmatpush1.bf16.msra.mxu1 %v4357_v44  ;;  %v4449_v43 = vld [vmem:[%s6308_s1 + $0x44c] ss:$16 sps:$4 sm:$0xff]   ;;  %v4444_v44 = vld [vmem:[%s6308_s1 + $0x440] ss:$16 sps:$4 sm:$0xff]  }
  0xa6   : > { %1297 = vmatprep.subr.bf16.mxu0 %v4362_v45  ;;  %1426 = vmatprep.subr.bf16.mxu1 %v4365_v46  ;;  %v4859_v45 = vmov 0   ;;  %v4452_v46 = vld [vmem:[%s6308_s1 + $0x464] ss:$16 sps:$4 sm:$0xff]  }
  0xa9   : > { %1298 = vmatpush1.bf16.msra.mxu0 %v4360_v47  ;;  %1427 = vmatpush1.bf16.msra.mxu1 %v4363_v48  ;;  %v4455_v47 = vld [vmem:[%s6308_s1 + $0x46c] ss:$16 sps:$4 sm:$0xff]   ;;  %v4450_v48 = vld [vmem:[%s6308_s1 + $0x460] ss:$16 sps:$4 sm:$0xff]  }
  0xaa   : > { %1299 = vmatprep.subr.bf16.mxu0 %v4368_v49  ;;  %1428 = vmatprep.subr.bf16.mxu1 %v4371_v50  ;;  %v4453_v49 = vld [vmem:[%s6308_s1 + $0x468] ss:$16 sps:$4 sm:$0xff]   ;;  %v4458_v50 = vld [vmem:[%s6310_s3 + $0x4] ss:$16 sps:$4 sm:$0xff]  }
  0xad   : > { %1300 = vmatpush1.bf16.msra.mxu0 %v4366_v51  ;;  %1429 = vmatpush1.bf16.msra.mxu1 %v4369_v52  ;;  %v4461_v51 = vld [vmem:[%s6310_s3 + $0xc] ss:$16 sps:$4 sm:$0xff]   ;;  %v367_v52 = vsel %vm361_vm1, %v365_v23, %v366_v21  ;;  %v4498_v23 = vld [vmem:[%s6310_s3 + $0xe0] ss:$16 sps:$4 sm:$0xff]  }
  0xae   : > { %1301 = vmatprep.subr.bf16.mxu0 %v4374_v53  ;;  %1430 = vmatprep.subr.bf16.mxu1 %v4377_v54  ;;  %v378_v53 = vpack.c.bf16 %v366_v21, %v367_v52  ;;  %v4456_v54 = vld [vmem:[%s6310_s3] ss:$16 sps:$4 sm:$0xff]   ;;  %v4500_v21 = vld [vmem:[%s6310_s3 + $0xe4] ss:$16 sps:$4 sm:$0xff]  }
  0xaf   : > { %v4554_v52 = vld [vmem:[%s6310_s3 + $0x204] ss:$16 sps:$4 sm:$0xff]  }
  0xb1   : > { %1302 = vmatpush1.bf16.msra.mxu0 %v4372_v55  ;;  %1431 = vmatpush1.bf16.msra.mxu1 %v4375_v56  ;;  %v4459_v55 = vld [vmem:[%s6310_s3 + $0x8] ss:$16 sps:$4 sm:$0xff]   ;;  %v4464_v56 = vld [vmem:[%s6310_s3 + $0x24] ss:$16 sps:$4 sm:$0xff]  }
  0xb2   : > { %1303 = vmatprep.subr.bf16.mxu0 %v4380_v57  ;;  %1432 = vmatprep.subr.bf16.mxu1 %v4383_v58  ;;  %v4467_v57 = vld [vmem:[%s6310_s3 + $0x2c] ss:$16 sps:$4 sm:$0xff]   ;;  %v4462_v58 = vld [vmem:[%s6310_s3 + $0x20] ss:$16 sps:$4 sm:$0xff]  }
  0xb5   : > { %1304 = vmatpush1.bf16.msra.mxu0 %v4378_v59  ;;  %1433 = vmatpush1.bf16.msra.mxu1 %v4381_v60  ;;  %v4465_v59 = vld [vmem:[%s6310_s3 + $0x28] ss:$16 sps:$4 sm:$0xff]   ;;  %v4470_v60 = vld [vmem:[%s6310_s3 + $0x44] ss:$16 sps:$4 sm:$0xff]  }
  0xb6   : > { %1305 = vmatprep.subr.bf16.mxu0 %v4386_v61  ;;  %1434 = vmatprep.subr.bf16.mxu1 %v4389_v62  ;;  %v4473_v61 = vld [vmem:[%s6310_s3 + $0x4c] ss:$16 sps:$4 sm:$0xff]   ;;  %v4468_v62 = vld [vmem:[%s6310_s3 + $0x40] ss:$16 sps:$4 sm:$0xff]  }
  0xb9   : > { %1306 = vmatpush1.bf16.msra.mxu0 %v4384_v63  ;;  %1435 = vmatpush1.bf16.msra.mxu1 %v4387_v0  ;;  %v4471_v63 = vld [vmem:[%s6310_s3 + $0x48] ss:$16 sps:$4 sm:$0xff]   ;;  %v4476_v0 = vld [vmem:[%s6310_s3 + $0x64] ss:$16 sps:$4 sm:$0xff]  }
  0xba   : > { %1307 = vmatprep.subr.bf16.mxu0 %v4392_v1  ;;  %1436 = vmatprep.subr.bf16.mxu1 %v4395_v2  ;;  %v4479_v1 = vld [vmem:[%s6310_s3 + $0x6c] ss:$16 sps:$4 sm:$0xff]   ;;  %v4474_v2 = vld [vmem:[%s6310_s3 + $0x60] ss:$16 sps:$4 sm:$0xff]  }
  0xbd   : > { %1308 = vmatpush1.bf16.msra.mxu0 %v4390_v3  ;;  %1437 = vmatpush1.bf16.msra.mxu1 %v4393_v4  ;;  %v4477_v3 = vld [vmem:[%s6310_s3 + $0x68] ss:$16 sps:$4 sm:$0xff]   ;;  %v4482_v4 = vld [vmem:[%s6310_s3 + $0x84] ss:$16 sps:$4 sm:$0xff]  }
  0xbe   : > { %1309 = vmatprep.subr.bf16.mxu0 %v4398_v5  ;;  %1438 = vmatprep.subr.bf16.mxu1 %v4401_v6  ;;  %v4485_v5 = vld [vmem:[%s6310_s3 + $0x8c] ss:$16 sps:$4 sm:$0xff]   ;;  %v4480_v6 = vld [vmem:[%s6310_s3 + $0x80] ss:$16 sps:$4 sm:$0xff]  }
  0xc1   : > { %1310 = vmatpush1.bf16.msra.mxu0 %v4396_v7  ;;  %1439 = vmatpush1.bf16.msra.mxu1 %v4399_v11  ;;  %v4483_v7 = vld [vmem:[%s6310_s3 + $0x88] ss:$16 sps:$4 sm:$0xff]   ;;  %v4488_v11 = vld [vmem:[%s6310_s3 + $0xa4] ss:$16 sps:$4 sm:$0xff]  }
  0xc2   : > { %1311 = vmatprep.subr.bf16.mxu0 %v4404_v12  ;;  %1440 = vmatprep.subr.bf16.mxu1 %v4407_v14  ;;  %v4491_v12 = vld [vmem:[%s6310_s3 + $0xac] ss:$16 sps:$4 sm:$0xff]   ;;  %v4486_v14 = vld [vmem:[%s6310_s3 + $0xa0] ss:$16 sps:$4 sm:$0xff]  }
  0xc5   : > { %1312 = vmatpush1.bf16.msra.mxu0 %v4402_v15  ;;  %1441 = vmatpush1.bf16.msra.mxu1 %v4405_v17  ;;  %v4489_v15 = vld [vmem:[%s6310_s3 + $0xa8] ss:$16 sps:$4 sm:$0xff]   ;;  %v4494_v17 = vld [vmem:[%s6310_s3 + $0xc4] ss:$16 sps:$4 sm:$0xff]  }
  0xc6   : > { %1313 = vmatprep.subr.bf16.mxu0 %v4410_v18  ;;  %1442 = vmatprep.subr.bf16.mxu1 %v4413_v19  ;;  %v4497_v18 = vld [vmem:[%s6310_s3 + $0xcc] ss:$16 sps:$4 sm:$0xff]   ;;  %v4492_v19 = vld [vmem:[%s6310_s3 + $0xc0] ss:$16 sps:$4 sm:$0xff]  }
  0xc9   : > { %1314 = vmatpush1.bf16.msra.mxu0 %v4408_v24  ;;  %1443 = vmatpush1.bf16.msra.mxu1 %v4411_v25  ;;  %v4501_v24 = vld [vmem:[%s6310_s3 + $0xe8] ss:$16 sps:$4 sm:$0xff]   ;;  %v4506_v25 = vld [vmem:[%s6310_s3 + $0x104] ss:$16 sps:$4 sm:$0xff]  }
  0xca   : > { %1315 = vmatprep.subr.bf16.mxu0 %v4416_v26  ;;  %1444 = vmatprep.subr.bf16.mxu1 %v4419_v27  ;;  %v4509_v26 = vld [vmem:[%s6310_s3 + $0x10c] ss:$16 sps:$4 sm:$0xff]   ;;  %v4504_v27 = vld [vmem:[%s6310_s3 + $0x100] ss:$16 sps:$4 sm:$0xff]  }
  0xcd   : > { %1316 = vmatpush1.bf16.msra.mxu0 %v4414_v8  ;;  %1445 = vmatpush1.bf16.msra.mxu1 %v4417_v9  ;;  %v4507_v8 = vld [vmem:[%s6310_s3 + $0x108] ss:$16 sps:$4 sm:$0xff]   ;;  %v4512_v9 = vld [vmem:[%s6310_s3 + $0x124] ss:$16 sps:$4 sm:$0xff]  }
  0xce   : > { %1317 = vmatprep.subr.bf16.mxu0 %v4422_v28  ;;  %1446 = vmatprep.subr.bf16.mxu1 %v4425_v29  ;;  %v4515_v28 = vld [vmem:[%s6310_s3 + $0x12c] ss:$16 sps:$4 sm:$0xff]   ;;  %v4510_v29 = vld [vmem:[%s6310_s3 + $0x120] ss:$16 sps:$4 sm:$0xff]  }
  0xd1   : > { %1318 = vmatpush1.bf16.msra.mxu0 %v4420_v30  ;;  %1447 = vmatpush1.bf16.msra.mxu1 %v4423_v31  ;;  %v4513_v30 = vld [vmem:[%s6310_s3 + $0x128] ss:$16 sps:$4 sm:$0xff]   ;;  %v4518_v31 = vld [vmem:[%s6310_s3 + $0x144] ss:$16 sps:$4 sm:$0xff]  }
  0xd2   : > { %1319 = vmatprep.subr.bf16.mxu0 %v4428_v32  ;;  %1448 = vmatprep.subr.bf16.mxu1 %v4431_v33  ;;  %v4521_v32 = vld [vmem:[%s6310_s3 + $0x14c] ss:$16 sps:$4 sm:$0xff]   ;;  %v4516_v33 = vld [vmem:[%s6310_s3 + $0x140] ss:$16 sps:$4 sm:$0xff]  }
  0xd5   : > { %1320 = vmatpush1.bf16.msra.mxu0 %v4426_v34  ;;  %1449 = vmatpush1.bf16.msra.mxu1 %v4429_v10  ;;  %v4519_v34 = vld [vmem:[%s6310_s3 + $0x148] ss:$16 sps:$4 sm:$0xff]   ;;  %v4524_v10 = vld [vmem:[%s6310_s3 + $0x164] ss:$16 sps:$4 sm:$0xff]  }
  0xd6   : > { %1332 = vmatprep.subr.bf16.mxu0 %v4434_v13  ;;  %1461 = vmatprep.subr.bf16.mxu1 %v4437_v35  ;;  %v4527_v13 = vld [vmem:[%s6310_s3 + $0x16c] ss:$16 sps:$4 sm:$0xff]   ;;  %v4522_v35 = vld [vmem:[%s6310_s3 + $0x160] ss:$16 sps:$4 sm:$0xff]  }
  0xd8   : > { %1322 = vmatmul.mubr.bf16.vlgmr.msra.gmra.mrb[0].mxu0 %v5223_v39  ;;  %1451 = vmatmul.mubr.bf16.vlgmr.msra.gmra.mrb[0].mxu1 %v5223_v39  ;;  %v4447_v39 = vld [vmem:[%s6308_s1 + $0x448] ss:$16 sps:$4 sm:$0xff]  }
  0xd9   : > { %1333 = vmatpush1.bf16.msra.mxu0 %v4432_v36  ;;  %1462 = vmatpush1.bf16.msra.mxu1 %v4435_v37  ;;  %v4525_v36 = vld [vmem:[%s6310_s3 + $0x168] ss:$16 sps:$4 sm:$0xff]   ;;  %v4530_v37 = vld [vmem:[%s6310_s3 + $0x184] ss:$16 sps:$4 sm:$0xff]  }
  0xda   : > { %1334 = vmatprep.subr.bf16.mxu0 %v4440_v38  ;;  %1463 = vmatprep.subr.bf16.mxu1 %v4443_v40  ;;  %v4533_v38 = vld [vmem:[%s6310_s3 + $0x18c] ss:$16 sps:$4 sm:$0xff]   ;;  %v4528_v40 = vld [vmem:[%s6310_s3 + $0x180] ss:$16 sps:$4 sm:$0xff]  }
  0xdb   : > { %1364 = vmatprep.mubr.bf16.mxu0 %v4859_v45  ;;  %1493 = vmatprep.mubr.bf16.mxu1 %v4859_v45  ;;  %v4545_v45 = vld [vmem:[%s6310_s3 + $0x1cc] ss:$16 sps:$4 sm:$0xff]  }
  0xdd   : > { %1335 = vmatpush1.bf16.msra.mxu0 %v4438_v16  ;;  %1464 = vmatpush1.bf16.msra.mxu1 %v4441_v41  ;;  %v4531_v16 = vld [vmem:[%s6310_s3 + $0x188] ss:$16 sps:$4 sm:$0xff]   ;;  %v4536_v41 = vld [vmem:[%s6310_s3 + $0x1a4] ss:$16 sps:$4 sm:$0xff]  }
  0xde   : > { %1336 = vmatprep.subr.bf16.mxu0 %v4446_v42  ;;  %1465 = vmatprep.subr.bf16.mxu1 %v4449_v43  ;;  %v4539_v42 = vld [vmem:[%s6310_s3 + $0x1ac] ss:$16 sps:$4 sm:$0xff]   ;;  %v4534_v43 = vld [vmem:[%s6310_s3 + $0x1a0] ss:$16 sps:$4 sm:$0xff]  }
  0xe1   : > { %1337 = vmatpush1.bf16.msra.mxu0 %v4444_v44  ;;  %1466 = vmatpush1.bf16.msra.mxu1 %v4447_v39  ;;  %v4537_v44 = vld [vmem:[%s6310_s3 + $0x1a8] ss:$16 sps:$4 sm:$0xff]   ;;  %v4542_v39 = vld [vmem:[%s6310_s3 + $0x1c4] ss:$16 sps:$4 sm:$0xff]  }
  0xe2   : > { %1338 = vmatprep.subr.bf16.mxu0 %v4452_v46  ;;  %1467 = vmatprep.subr.bf16.mxu1 %v4455_v47  ;;  %v4540_v46 = vld [vmem:[%s6310_s3 + $0x1c0] ss:$16 sps:$4 sm:$0xff]   ;;  %v4543_v47 = vld [vmem:[%s6310_s3 + $0x1c8] ss:$16 sps:$4 sm:$0xff]  }
  0xe5   : > { %1339 = vmatpush1.bf16.msra.mxu0 %v4450_v48  ;;  %1468 = vmatpush1.bf16.msra.mxu1 %v4453_v49  ;;  %v4548_v48 = vld [vmem:[%s6310_s3 + $0x1e4] ss:$16 sps:$4 sm:$0xff]   ;;  %v4546_v49 = vld [vmem:[%s6310_s3 + $0x1e0] ss:$16 sps:$4 sm:$0xff]  }
  0xe6   : > { %2765 = vmatprep.subr.bf16.mxu0 %v4458_v50  ;;  %2888 = vmatprep.subr.bf16.mxu1 %v4461_v51  ;;  %v4549_v50 = vld [vmem:[%s6310_s3 + $0x1e8] ss:$16 sps:$4 sm:$0xff]   ;;  %v4551_v51 = vld [vmem:[%s6310_s3 + $0x1ec] ss:$16 sps:$4 sm:$0xff]  }
  0xe8   : > { %3804 = vmatmul.mubr.msk.bf16.vlgmr.msra.gmra.mrb[0].mxu0 %vm354_vm2, %v378_v53  ;;  %3805 = vmatmul.mubr.msk.bf16.vlgmr.msra.gmra.mrb[0].mxu1 %vm354_vm2, %v378_v53  ;;  %v4557_v53 = vld [vmem:[%s6310_s3 + $0x20c] ss:$16 sps:$4 sm:$0xff]  }
  0xe9   : > { %2766 = vmatpush1.bf16.msra.mxu0 %v4456_v54  ;;  %2889 = vmatpush1.bf16.msra.mxu1 %v4459_v55 }
  0xea   : > { %2767 = vmatprep.subr.bf16.mxu0 %v4464_v56  ;;  %2890 = vmatprep.subr.bf16.mxu1 %v4467_v57 }
  0xed   : > { %2768 = vmatpush1.bf16.msra.mxu0 %v4462_v58  ;;  %2891 = vmatpush1.bf16.msra.mxu1 %v4465_v59 }
  0xee   : > { %2769 = vmatprep.subr.bf16.mxu0 %v4470_v60  ;;  %2892 = vmatprep.subr.bf16.mxu1 %v4473_v61 }
  0xf1   : > { %2770 = vmatpush1.bf16.msra.mxu0 %v4468_v62  ;;  %2893 = vmatpush1.bf16.msra.mxu1 %v4471_v63  ;;  %v3806_v62 = vld [vmem:[%s6309_s2] ss:$0 sm:$0xff] }
  0xf2   : > { %2771 = vmatprep.subr.bf16.mxu0 %v4476_v0  ;;  %2894 = vmatprep.subr.bf16.mxu1 %v4479_v1 }
  0xf5   : > { %2772 = vmatpush1.bf16.msra.mxu0 %v4474_v2  ;;  %2895 = vmatpush1.bf16.msra.mxu1 %v4477_v3 }
  0xf6   : > { %2773 = vmatprep.subr.bf16.mxu0 %v4482_v4  ;;  %2896 = vmatprep.subr.bf16.mxu1 %v4485_v5 }
  0xf9   : > { %2774 = vmatpush1.bf16.msra.mxu0 %v4480_v6  ;;  %2897 = vmatpush1.bf16.msra.mxu1 %v4483_v7 }
  0xfa   : > { %2775 = vmatprep.subr.bf16.mxu0 %v4488_v11  ;;  %2898 = vmatprep.subr.bf16.mxu1 %v4491_v12 }
  0xfd   : > { %2776 = vmatpush1.bf16.msra.mxu0 %v4486_v14  ;;  %2899 = vmatpush1.bf16.msra.mxu1 %v4489_v15 }
  0xfe   : > { %2777 = vmatprep.subr.bf16.mxu0 %v4494_v17  ;;  %2900 = vmatprep.subr.bf16.mxu1 %v4497_v18 }
 0x101   : > { %2778 = vmatpush1.bf16.msra.mxu0 %v4492_v19  ;;  %2901 = vmatpush1.bf16.msra.mxu1 %v4495_v20 }
 0x102   : > { %2779 = vmatprep.subr.bf16.mxu0 %v4500_v21  ;;  %2902 = vmatprep.subr.bf16.mxu1 %v4503_v22 }
 0x105   : > { %2780 = vmatpush1.bf16.msra.mxu0 %v4498_v23  ;;  %2903 = vmatpush1.bf16.msra.mxu1 %v4501_v24 }
 0x106   : > { %2781 = vmatprep.subr.bf16.mxu0 %v4506_v25  ;;  %2904 = vmatprep.subr.bf16.mxu1 %v4509_v26 }
 0x109   : > { %2782 = vmatpush1.bf16.msra.mxu0 %v4504_v27  ;;  %2905 = vmatpush1.bf16.msra.mxu1 %v4507_v8 }
 0x10a   : > { %2783 = vmatprep.subr.bf16.mxu0 %v4512_v9  ;;  %2906 = vmatprep.subr.bf16.mxu1 %v4515_v28 }
 0x10d   : > { %2784 = vmatpush1.bf16.msra.mxu0 %v4510_v29  ;;  %2907 = vmatpush1.bf16.msra.mxu1 %v4513_v30 }
 0x10e   : > { %2785 = vmatprep.subr.bf16.mxu0 %v4518_v31  ;;  %2908 = vmatprep.subr.bf16.mxu1 %v4521_v32 }
 0x111   : > { %2786 = vmatpush1.bf16.msra.mxu0 %v4516_v33  ;;  %2909 = vmatpush1.bf16.msra.mxu1 %v4519_v34 }
 0x112   : > { %2787 = vmatprep.subr.bf16.mxu0 %v4524_v10  ;;  %2910 = vmatprep.subr.bf16.mxu1 %v4527_v13 }
 0x115   : > { %2788 = vmatpush1.bf16.msra.mxu0 %v4522_v35  ;;  %2911 = vmatpush1.bf16.msra.mxu1 %v4525_v36 }
 0x116   : > { %2789 = vmatprep.subr.bf16.mxu0 %v4530_v37  ;;  %2912 = vmatprep.subr.bf16.mxu1 %v4533_v38 }
 0x119   : > { %2790 = vmatpush1.bf16.msra.mxu0 %v4528_v40  ;;  %2913 = vmatpush1.bf16.msra.mxu1 %v4531_v16  ;;  %v4552_v16 = vld [vmem:[%s6310_s3 + $0x200] ss:$16 sps:$4 sm:$0xff]  }
 0x11a   : > { %2791 = vmatprep.subr.bf16.mxu0 %v4536_v41  ;;  %2914 = vmatprep.subr.bf16.mxu1 %v4539_v42  ;;  %v4555_v41 = vld [vmem:[%s6310_s3 + $0x208] ss:$16 sps:$4 sm:$0xff]  }
 0x11d   : > { %2792 = vmatpush1.bf16.msra.mxu0 %v4534_v43  ;;  %2915 = vmatpush1.bf16.msra.mxu1 %v4537_v44 }
 0x11e   : > { %2793 = vmatprep.subr.bf16.mxu0 %v4542_v39  ;;  %2916 = vmatprep.subr.bf16.mxu1 %v4545_v45 }
 0x121   : > { %2794 = vmatpush1.bf16.msra.mxu0 %v4540_v46  ;;  %2917 = vmatpush1.bf16.msra.mxu1 %v4543_v47 }
 0x122   : > { %2795 = vmatprep.subr.bf16.mxu0 %v4548_v48  ;;  %2918 = vmatprep.subr.bf16.mxu1 %v4551_v51 }
 0x125   : > { %2796 = vmatpush1.bf16.msra.mxu0 %v4546_v49  ;;  %2919 = vmatpush1.bf16.msra.mxu1 %v4549_v50  ;;  %v4560_v49 = vld [vmem:[%s6310_s3 + $0x224] ss:$16 sps:$4 sm:$0xff]   ;;  %v4563_v50 = vld [vmem:[%s6310_s3 + $0x22c] ss:$16 sps:$4 sm:$0xff]  }
 0x126   : > { %2806 = vmatprep.subr.bf16.mxu0 %v4554_v52  ;;  %2929 = vmatprep.subr.bf16.mxu1 %v4557_v53 }
 0x1bb   : > { %v1366_v54 = vpop.f32.mrb[0].mxu0  ;;  %v1495_v55 = vpop.f32.mrb[0].mxu1 }
 0x1bc   : > { %v1368_v56 = vpop.f32.mrb[1].mxu0  ;;  %v1497_v57 = vpop.f32.mrb[1].mxu1 }
 0x1bd   : > { %v1504_v58 = vmax.f32 %v1366_v54, %v1368_v56  ;;  %v1506_v59 = vmax.f32 %v1495_v55, %v1497_v57  ;;  %v1370_v60 = vpop.f32.mrb[2].mxu0  ;;  %v1499_v61 = vpop.f32.mrb[2].mxu1  ;;  %v4558_v57 = vld [vmem:[%s6310_s3 + $0x220] ss:$16 sps:$4 sm:$0xff]  }
 0x1be   : > { %v1372_v63 = vpop.f32.mrb[3].mxu0  ;;  %v1501_v0 = vpop.f32.mrb[3].mxu1 }
 0x1bf   : > { %v1508_v1 = vmax.f32 %v1504_v58, %v1506_v59  ;;  %v1505_v2 = vmax.f32 %v1370_v60, %v1372_v63  ;;  %v1507_v3 = vmax.f32 %v1499_v61, %v1501_v0  ;;  %v4561_v58 = vld [vmem:[%s6310_s3 + $0x228] ss:$16 sps:$4 sm:$0xff]   ;;  %v4566_v63 = vld [vmem:[%s6310_s3 + $0x244] ss:$16 sps:$4 sm:$0xff]   ;;  %v4569_v0 = vld [vmem:[%s6310_s3 + $0x24c] ss:$16 sps:$4 sm:$0xff]  }
 0x1c1   : > { %v1517_v4 = vadd.f32 %v3806_v62, %v1508_v1  ;;  %v1509_v5 = vmax.f32 %v1505_v2, %v1507_v3 }
 0x1c3   : > { %v5655_v6 = vmax.f32 %v1517_v4, 0.0  ;;  %v1518_v7 = vadd.f32 %v3806_v62, %v1509_v5 }
 0x1c5   : > { %v1522_v11 = vrot.slane %v5655_v6, 1  ;;  %v1520_v12 = vmax.f32 %v1518_v7, 0.0  ;;  %v1524_v14 = vrot.slane %v5655_v6, 2  ;;  %v1526_v15 = vrot.slane %v5655_v6, 3  ;;  %v4564_v7 = vld [vmem:[%s6310_s3 + $0x240] ss:$16 sps:$4 sm:$0xff]  }
 0x1c6   : > { %v1530_v17 = vrot.slane %v5655_v6, 5  ;;  %v1528_v18 = vrot.slane %v5655_v6, 4 }
 0x1c7   : > { %v5662_v19 = vrot.slane %v1520_v12, 4  ;;  %v1535_v20 = vrot.slane %v1520_v12, 2  ;;  %v5664_v21 = vrot.slane %v1520_v12, 5  ;;  %v1538_v22 = vrot.slane %v1522_v11, 1 }
 0x1c8   : > { %v1548_v23 = vrot.slane %v1522_v11, 2  ;;  %v1558_v24 = vrot.slane %v1522_v11, 3  ;;  %v1580_v25 = vsel %vm1579_vm3, %v5655_v6, %v1522_v11  ;;  %v1536_v26 = vrot.slane %v1520_v12, 3 }
 0x1c9   : > { %v1581_v27 = vsel %vm1579_vm3, %v1522_v11, %v1538_v22  ;;  %v1587_v8 = vsel %vm1586_vm4, %v1580_v25, %v1524_v14  ;;  %v1540_v9 = vrot.slane %v1526_v15, 1  ;;  %v1550_v28 = vrot.slane %v1526_v15, 2  ;;  %v4567_v11 = vld [vmem:[%s6310_s3 + $0x248] ss:$16 sps:$4 sm:$0xff]   ;;  %v4582_v25 = vld [vmem:[%s6310_s3 + $0x2a0] ss:$16 sps:$4 sm:$0xff]  }
 0x1ca   : > { %v1588_v29 = vsel %vm1586_vm4, %v1581_v27, %v1548_v23  ;;  %v1594_v30 = vsel %vm1593_vm5, %v1587_v8, %v1526_v15  ;;  %v1560_v31 = vrot.slane %v1536_v26, 3  ;;  %v1570_v32 = vrot.slane %v1536_v26, 4  ;;  %v4579_v22 = vld [vmem:[%s6310_s3 + $0x288] ss:$16 sps:$4 sm:$0xff]   ;;  %v4584_v23 = vld [vmem:[%s6310_s3 + $0x2a4] ss:$16 sps:$4 sm:$0xff]  }
 0x1cb   : > { %v1595_v33 = vsel %vm1593_vm5, %v1588_v29, %v1558_v24  ;;  %v1601_v34 = vsel %vm1600_vm6, %v1594_v30, %v5662_v19  ;;  %v1583_v10 = vsel %vm1579_vm3, %v1526_v15, %v1540_v9  ;;  %v1539_v13 = vrot.slane %v1524_v14, 1  ;;  %v4575_v15 = vld [vmem:[%s6310_s3 + $0x26c] ss:$16 sps:$4 sm:$0xff]   ;;  %v4585_v26 = vld [vmem:[%s6310_s3 + $0x2a8] ss:$16 sps:$4 sm:$0xff]  }
 0x1cc   : > { %v1602_v35 = vsel %vm1600_vm6, %v1595_v33, %v5664_v21  ;;  %v1607_v36 = vpack.c.bf16 %v1601_v34, %v1601_v34  ;;  %v1590_v37 = vsel %vm1586_vm4, %v1583_v10, %v1550_v28  ;;  %v1549_v38 = vrot.slane %v1524_v14, 2  ;;  %v4587_v24 = vld [vmem:[%s6310_s3 + $0x2ac] ss:$16 sps:$4 sm:$0xff]   ;;  %v4590_v27 = vld [vmem:[%s6310_s3 + $0x2c4] ss:$16 sps:$4 sm:$0xff]  }
 0x1cd   : > { %v1608_v40 = vpack.c.bf16 %v1602_v35, %v1602_v35  ;;  %v1597_v42 = vsel %vm1593_vm5, %v1590_v37, %v1560_v31  ;;  %v1559_v43 = vrot.slane %v1535_v20, 3  ;;  %v1569_v44 = vrot.slane %v1535_v20, 4  ;;  %v4581_v20 = vld [vmem:[%s6310_s3 + $0x28c] ss:$16 sps:$4 sm:$0xff]   ;;  %v4588_v9 = vld [vmem:[%s6310_s3 + $0x2c0] ss:$16 sps:$4 sm:$0xff]  }
 0x1ce   : > { %v1604_v39 = vsel %vm1600_vm6, %v1597_v42, %v1570_v32  ;;  %v1582_v45 = vsel %vm1579_vm3, %v1524_v14, %v1539_v13  ;;  %v1542_v46 = vrot.slane %v1530_v17, 1  ;;  %v1552_v47 = vrot.slane %v5664_v21, 2  ;;  %v4572_v14 = vld [vmem:[%s6310_s3 + $0x264] ss:$16 sps:$4 sm:$0xff]   ;;  %v4593_v8 = vld [vmem:[%s6310_s3 + $0x2cc] ss:$16 sps:$4 sm:$0xff]  }
 0x1cf   : > { %2797 = vmatprep.mubr.bf16.mxu0 %v1608_v40  ;;  %2920 = vmatprep.mubr.bf16.mxu1 %v1608_v40  ;;  %v1610_v48 = vpack.c.bf16 %v1604_v39, %v1604_v39  ;;  %v1589_v51 = vsel %vm1586_vm4, %v1582_v45, %v1549_v38  ;;  %v1562_v52 = vrot.slane %v5664_v21, 3  ;;  %v1541_v55 = vrot.slane %v1528_v18, 1  ;;  %v4591_v28 = vld [vmem:[%s6310_s3 + $0x2c8] ss:$16 sps:$4 sm:$0xff]   ;;  %v4596_v29 = vld [vmem:[%s6310_s3 + $0x2e4] ss:$16 sps:$4 sm:$0xff]  }
 0x1d0   : > { %2798 = vmatmul.mubr.bf16.vlgmr.msra.gmra.mrb[4].mxu0 %v1607_v36  ;;  %2921 = vmatmul.mubr.bf16.vlgmr.msra.gmra.mrb[4].mxu1 %v1607_v36  ;;  %v1596_v53 = vsel %vm1593_vm5, %v1589_v51, %v1559_v43  ;;  %v1585_v54 = vsel %vm1579_vm3, %v1530_v17, %v1542_v46  ;;  %v1551_v56 = vrot.slane %v5662_v19, 2  ;;  %v1572_v60 = vrot.slane %v5664_v21, 4  ;;  %v4570_v17 = vld [vmem:[%s6310_s3 + $0x260] ss:$16 sps:$4 sm:$0xff]   ;;  %v4599_v30 = vld [vmem:[%s6310_s3 + $0x2ec] ss:$16 sps:$4 sm:$0xff]  }
 0x1d1   : > { %2807 = vmatpush1.bf16.msra.mxu0 %v4552_v16  ;;  %2930 = vmatpush1.bf16.msra.mxu1 %v4555_v41  ;;  %v5707_v59 = vsel %vm1600_vm6, %v1596_v53, %v1569_v44  ;;  %v1592_v61 = vsel %vm1586_vm4, %v1585_v54, %v1552_v47  ;;  %v1561_v62 = vrot.slane %v5662_v19, 3  ;;  %v1584_v2 = vsel %vm1579_vm3, %v1528_v18, %v1541_v55  ;;  %v4573_v18 = vld [vmem:[%s6310_s3 + $0x268] ss:$16 sps:$4 sm:$0xff]   ;;  %v4576_v21 = vld [vmem:[%s6310_s3 + $0x280] ss:$16 sps:$4 sm:$0xff]  }
 0x1d2   : > { %2838 = vmatprep.mubr.bf16.mxu0 %v1610_v48  ;;  %2961 = vmatprep.mubr.bf16.mxu1 %v1610_v48  ;;  %v1599_v1 = vsel %vm1593_vm5, %v1592_v61, %v1562_v52  ;;  %v1571_v4 = vrot.slane %v5662_v19, 4  ;;  %v1591_v5 = vsel %vm1586_vm4, %v1584_v2, %v1551_v56  ;;  %v4578_v19 = vld [vmem:[%s6310_s3 + $0x284] ss:$16 sps:$4 sm:$0xff]   ;;  %v4594_v31 = vld [vmem:[%s6310_s3 + $0x2e0] ss:$16 sps:$4 sm:$0xff]   ;;  %v1609_v2 = vpack.c.bf16 %v5707_v59, %v5707_v59 }
 0x1d3   : > { %2808 = vmatprep.subr.bf16.mxu0 %v4560_v49  ;;  %2931 = vmatprep.subr.bf16.mxu1 %v4563_v50  ;;  %v5721_v3 = vsel %vm1600_vm6, %v1599_v1, %v1572_v60  ;;  %v1598_v6 = vsel %vm1593_vm5, %v1591_v5, %v1561_v62  ;;  %v4597_v32 = vld [vmem:[%s6310_s3 + $0x2e8] ss:$16 sps:$4 sm:$0xff]   ;;  %v4602_v33 = vld [vmem:[%s6310_s3 + $0x304] ss:$16 sps:$4 sm:$0xff]   ;;  %v4605_v34 = vld [vmem:[%s6310_s3 + $0x30c] ss:$16 sps:$4 sm:$0xff]  }
 0x1d4   : > { %v5733_v12 = vsel %vm1600_vm6, %v1598_v6, %v1571_v4  ;;  %v4600_v10 = vld [vmem:[%s6310_s3 + $0x300] ss:$16 sps:$4 sm:$0xff]   ;;  %v4603_v13 = vld [vmem:[%s6310_s3 + $0x308] ss:$16 sps:$4 sm:$0xff]   ;;  %v4608_v35 = vld [vmem:[%s6310_s3 + $0x324] ss:$16 sps:$4 sm:$0xff]   ;;  %v1612_v5 = vpack.c.bf16 %v5721_v3, %v5721_v3 }
 0x1d5   : > { %2809 = vmatpush1.bf16.msra.mxu0 %v4558_v57  ;;  %2932 = vmatpush1.bf16.msra.mxu1 %v4561_v58  ;;  %v4611_v36 = vld [vmem:[%s6310_s3 + $0x32c] ss:$16 sps:$4 sm:$0xff]   ;;  %v4606_v37 = vld [vmem:[%s6310_s3 + $0x320] ss:$16 sps:$4 sm:$0xff]   ;;  %v4609_v38 = vld [vmem:[%s6310_s3 + $0x328] ss:$16 sps:$4 sm:$0xff]  }
 0x1d6   : > { %2810 = vmatprep.subr.bf16.mxu0 %v4566_v63  ;;  %2933 = vmatprep.subr.bf16.mxu1 %v4569_v0  ;;  %v4614_v40 = vld [vmem:[%s6310_s3 + $0x344] ss:$16 sps:$4 sm:$0xff]   ;;  %v4617_v16 = vld [vmem:[%s6310_s3 + $0x34c] ss:$16 sps:$4 sm:$0xff]   ;;  %v4612_v41 = vld [vmem:[%s6310_s3 + $0x340] ss:$16 sps:$4 sm:$0xff]  }
 0x1d7   : > { %v4615_v42 = vld [vmem:[%s6310_s3 + $0x348] ss:$16 sps:$4 sm:$0xff]   ;;  %v4620_v43 = vld [vmem:[%s6310_s3 + $0x364] ss:$16 sps:$4 sm:$0xff]   ;;  %v4623_v44 = vld [vmem:[%s6310_s3 + $0x36c] ss:$16 sps:$4 sm:$0xff]  }
 0x1d8   : > { %v4618_v39 = vld [vmem:[%s6310_s3 + $0x360] ss:$16 sps:$4 sm:$0xff]   ;;  %v4621_v45 = vld [vmem:[%s6310_s3 + $0x368] ss:$16 sps:$4 sm:$0xff]   ;;  %v4626_v46 = vld [vmem:[%s6310_s3 + $0x384] ss:$16 sps:$4 sm:$0xff]  }
 0x1d9   : > { %2811 = vmatpush1.bf16.msra.mxu0 %v4564_v7  ;;  %2934 = vmatpush1.bf16.msra.mxu1 %v4567_v11  ;;  %v4629_v47 = vld [vmem:[%s6310_s3 + $0x38c] ss:$16 sps:$4 sm:$0xff]   ;;  %v4624_v48 = vld [vmem:[%s6310_s3 + $0x380] ss:$16 sps:$4 sm:$0xff]   ;;  %v4627_v49 = vld [vmem:[%s6310_s3 + $0x388] ss:$16 sps:$4 sm:$0xff]  }
 0x1da   : > { %2812 = vmatprep.subr.bf16.mxu0 %v4572_v14  ;;  %2935 = vmatprep.subr.bf16.mxu1 %v4575_v15  ;;  %v4632_v50 = vld [vmem:[%s6310_s3 + $0x3a4] ss:$16 sps:$4 sm:$0xff]   ;;  %v4635_v51 = vld [vmem:[%s6310_s3 + $0x3ac] ss:$16 sps:$4 sm:$0xff]   ;;  %v4630_v52 = vld [vmem:[%s6310_s3 + $0x3a0] ss:$16 sps:$4 sm:$0xff]  }
 0x1db   : > { %v4633_v53 = vld [vmem:[%s6310_s3 + $0x3a8] ss:$16 sps:$4 sm:$0xff]   ;;  %v4638_v54 = vld [vmem:[%s6310_s3 + $0x3c4] ss:$16 sps:$4 sm:$0xff]   ;;  %v4641_v55 = vld [vmem:[%s6310_s3 + $0x3cc] ss:$16 sps:$4 sm:$0xff]  }
 0x1dc   : > { %v4636_v56 = vld [vmem:[%s6310_s3 + $0x3c0] ss:$16 sps:$4 sm:$0xff]   ;;  %v4639_v57 = vld [vmem:[%s6310_s3 + $0x3c8] ss:$16 sps:$4 sm:$0xff]   ;;  %v4644_v58 = vld [vmem:[%s6310_s3 + $0x3e4] ss:$16 sps:$4 sm:$0xff]  }
 0x1dd   : > { %2813 = vmatpush1.bf16.msra.mxu0 %v4570_v17  ;;  %2936 = vmatpush1.bf16.msra.mxu1 %v4573_v18  ;;  %v4647_v60 = vld [vmem:[%s6310_s3 + $0x3ec] ss:$16 sps:$4 sm:$0xff]   ;;  %v4642_v61 = vld [vmem:[%s6310_s3 + $0x3e0] ss:$16 sps:$4 sm:$0xff]   ;;  %v4645_v62 = vld [vmem:[%s6310_s3 + $0x3e8] ss:$16 sps:$4 sm:$0xff]  }
 0x1de   : > { %2814 = vmatprep.subr.bf16.mxu0 %v4578_v19  ;;  %2937 = vmatprep.subr.bf16.mxu1 %v4581_v20  ;;  %v4650_v63 = vld [vmem:[%s6310_s3 + $0x404] ss:$16 sps:$4 sm:$0xff]   ;;  %v4653_v0 = vld [vmem:[%s6310_s3 + $0x40c] ss:$16 sps:$4 sm:$0xff]   ;;  %v4648_v1 = vld [vmem:[%s6310_s3 + $0x400] ss:$16 sps:$4 sm:$0xff]  }
 0x1df   : > { %v4651_v4 = vld [vmem:[%s6310_s3 + $0x408] ss:$16 sps:$4 sm:$0xff]   ;;  %v4656_v6 = vld [vmem:[%s6310_s3 + $0x424] ss:$16 sps:$4 sm:$0xff]   ;;  %v4659_v7 = vld [vmem:[%s6310_s3 + $0x42c] ss:$16 sps:$4 sm:$0xff]  }
 0x1e0   : > { %v4654_v59 = vld [vmem:[%s6310_s3 + $0x420] ss:$16 sps:$4 sm:$0xff]   ;;  %v4657_v3 = vld [vmem:[%s6310_s3 + $0x428] ss:$16 sps:$4 sm:$0xff]   ;;  %v4662_v11 = vld [vmem:[%s6310_s3 + $0x444] ss:$16 sps:$4 sm:$0xff]  }
 0x1e1   : > { %2815 = vmatpush1.bf16.msra.mxu0 %v4576_v21  ;;  %2938 = vmatpush1.bf16.msra.mxu1 %v4579_v22  ;;  %v4665_v14 = vld [vmem:[%s6310_s3 + $0x44c] ss:$16 sps:$4 sm:$0xff]   ;;  %v4660_v15 = vld [vmem:[%s6310_s3 + $0x440] ss:$16 sps:$4 sm:$0xff]   ;;  %v4663_v17 = vld [vmem:[%s6310_s3 + $0x448] ss:$16 sps:$4 sm:$0xff]  }
 0x1e2   : > { %2816 = vmatprep.subr.bf16.mxu0 %v4584_v23  ;;  %2939 = vmatprep.subr.bf16.mxu1 %v4587_v24  ;;  %v4668_v18 = vld [vmem:[%s6310_s3 + $0x464] ss:$16 sps:$4 sm:$0xff]   ;;  %v4671_v19 = vld [vmem:[%s6310_s3 + $0x46c] ss:$16 sps:$4 sm:$0xff]   ;;  %v4666_v20 = vld [vmem:[%s6310_s3 + $0x460] ss:$16 sps:$4 sm:$0xff]  }
 0x1e3   : > { %v4669_v21 = vld [vmem:[%s6310_s3 + $0x468] ss:$16 sps:$4 sm:$0xff]   ;;  %v4674_v22 = vld [vmem:[%s6310_s3 + $0x484] ss:$16 sps:$4 sm:$0xff]   ;;  %v4677_v23 = vld [vmem:[%s6310_s3 + $0x48c] ss:$16 sps:$4 sm:$0xff]  }
 0x1e4   : > { %v4672_v24 = vld [vmem:[%s6310_s3 + $0x480] ss:$16 sps:$4 sm:$0xff]  }
 0x1e5   : > { %2817 = vmatpush1.bf16.msra.mxu0 %v4582_v25  ;;  %2940 = vmatpush1.bf16.msra.mxu1 %v4585_v26  ;;  %v4675_v25 = vld [vmem:[%s6310_s3 + $0x488] ss:$16 sps:$4 sm:$0xff]   ;;  %v4680_v26 = vld [vmem:[%s6310_s3 + $0x4a4] ss:$16 sps:$4 sm:$0xff]  }
 0x1e6   : > { %2818 = vmatprep.subr.bf16.mxu0 %v4590_v27  ;;  %2941 = vmatprep.subr.bf16.mxu1 %v4593_v8  ;;  %v4683_v27 = vld [vmem:[%s6310_s3 + $0x4ac] ss:$16 sps:$4 sm:$0xff]   ;;  %v4678_v8 = vld [vmem:[%s6310_s3 + $0x4a0] ss:$16 sps:$4 sm:$0xff]  }
 0x1e9   : > { %2819 = vmatpush1.bf16.msra.mxu0 %v4588_v9  ;;  %2942 = vmatpush1.bf16.msra.mxu1 %v4591_v28  ;;  %v4681_v9 = vld [vmem:[%s6310_s3 + $0x4a8] ss:$16 sps:$4 sm:$0xff]   ;;  %v4686_v28 = vld [vmem:[%s6310_s3 + $0x4c4] ss:$16 sps:$4 sm:$0xff]  }
 0x1ea   : > { %2820 = vmatprep.subr.bf16.mxu0 %v4596_v29  ;;  %2943 = vmatprep.subr.bf16.mxu1 %v4599_v30  ;;  %v4689_v29 = vld [vmem:[%s6310_s3 + $0x4cc] ss:$16 sps:$4 sm:$0xff]   ;;  %v4684_v30 = vld [vmem:[%s6310_s3 + $0x4c0] ss:$16 sps:$4 sm:$0xff]  }
 0x1ed   : > { %2821 = vmatpush1.bf16.msra.mxu0 %v4594_v31  ;;  %2944 = vmatpush1.bf16.msra.mxu1 %v4597_v32  ;;  %v4687_v31 = vld [vmem:[%s6310_s3 + $0x4c8] ss:$16 sps:$4 sm:$0xff]   ;;  %v4692_v32 = vld [vmem:[%s6310_s3 + $0x4e4] ss:$16 sps:$4 sm:$0xff]  }
 0x1ee   : > { %2822 = vmatprep.subr.bf16.mxu0 %v4602_v33  ;;  %2945 = vmatprep.subr.bf16.mxu1 %v4605_v34  ;;  %v4695_v33 = vld [vmem:[%s6310_s3 + $0x4ec] ss:$16 sps:$4 sm:$0xff]   ;;  %v4690_v34 = vld [vmem:[%s6310_s3 + $0x4e0] ss:$16 sps:$4 sm:$0xff]  }
 0x1f1   : > { %2823 = vmatpush1.bf16.msra.mxu0 %v4600_v10  ;;  %2946 = vmatpush1.bf16.msra.mxu1 %v4603_v13  ;;  %v4693_v10 = vld [vmem:[%s6310_s3 + $0x4e8] ss:$16 sps:$4 sm:$0xff]   ;;  %v4698_v13 = vld [vmem:[%s6310_s3 + $0x504] ss:$16 sps:$4 sm:$0xff]  }
 0x1f2   : > { %2824 = vmatprep.subr.bf16.mxu0 %v4608_v35  ;;  %2947 = vmatprep.subr.bf16.mxu1 %v4611_v36  ;;  %v4701_v35 = vld [vmem:[%s6310_s3 + $0x50c] ss:$16 sps:$4 sm:$0xff]   ;;  %v4696_v36 = vld [vmem:[%s6310_s3 + $0x500] ss:$16 sps:$4 sm:$0xff]  }
 0x1f5   : > { %2825 = vmatpush1.bf16.msra.mxu0 %v4606_v37  ;;  %2948 = vmatpush1.bf16.msra.mxu1 %v4609_v38  ;;  %v4699_v37 = vld [vmem:[%s6310_s3 + $0x508] ss:$16 sps:$4 sm:$0xff]   ;;  %v4704_v38 = vld [vmem:[%s6310_s3 + $0x524] ss:$16 sps:$4 sm:$0xff]  }
 0x1f6   : > { %2826 = vmatprep.subr.bf16.mxu0 %v4614_v40  ;;  %2949 = vmatprep.subr.bf16.mxu1 %v4617_v16  ;;  %v4707_v40 = vld [vmem:[%s6310_s3 + $0x52c] ss:$16 sps:$4 sm:$0xff]   ;;  %v4702_v16 = vld [vmem:[%s6310_s3 + $0x520] ss:$16 sps:$4 sm:$0xff]  }
 0x1f9   : > { %2827 = vmatpush1.bf16.msra.mxu0 %v4612_v41  ;;  %2950 = vmatpush1.bf16.msra.mxu1 %v4615_v42  ;;  %v4705_v41 = vld [vmem:[%s6310_s3 + $0x528] ss:$16 sps:$4 sm:$0xff]   ;;  %v4710_v42 = vld [vmem:[%s6310_s3 + $0x544] ss:$16 sps:$4 sm:$0xff]  }
 0x1fa   : > { %2828 = vmatprep.subr.bf16.mxu0 %v4620_v43  ;;  %2951 = vmatprep.subr.bf16.mxu1 %v4623_v44  ;;  %v4713_v43 = vld [vmem:[%s6310_s3 + $0x54c] ss:$16 sps:$4 sm:$0xff]   ;;  %v4708_v44 = vld [vmem:[%s6310_s3 + $0x540] ss:$16 sps:$4 sm:$0xff]  }
 0x1fd   : > { %2829 = vmatpush1.bf16.msra.mxu0 %v4618_v39  ;;  %2952 = vmatpush1.bf16.msra.mxu1 %v4621_v45  ;;  %v4711_v39 = vld [vmem:[%s6310_s3 + $0x548] ss:$16 sps:$4 sm:$0xff]   ;;  %v4716_v45 = vld [vmem:[%s6310_s3 + $0x564] ss:$16 sps:$4 sm:$0xff]  }
 0x1fe   : > { %2830 = vmatprep.subr.bf16.mxu0 %v4626_v46  ;;  %2953 = vmatprep.subr.bf16.mxu1 %v4629_v47  ;;  %v4719_v46 = vld [vmem:[%s6310_s3 + $0x56c] ss:$16 sps:$4 sm:$0xff]   ;;  %v4714_v47 = vld [vmem:[%s6310_s3 + $0x560] ss:$16 sps:$4 sm:$0xff]  }
 0x201   : > { %2831 = vmatpush1.bf16.msra.mxu0 %v4624_v48  ;;  %2954 = vmatpush1.bf16.msra.mxu1 %v4627_v49  ;;  %v4717_v48 = vld [vmem:[%s6310_s3 + $0x568] ss:$16 sps:$4 sm:$0xff]   ;;  %v4722_v49 = vld [vmem:[%s6310_s3 + $0x584] ss:$16 sps:$4 sm:$0xff]  }
 0x202   : > { %2832 = vmatprep.subr.bf16.mxu0 %v4632_v50  ;;  %2955 = vmatprep.subr.bf16.mxu1 %v4635_v51  ;;  %v4725_v50 = vld [vmem:[%s6310_s3 + $0x58c] ss:$16 sps:$4 sm:$0xff]   ;;  %v4720_v51 = vld [vmem:[%s6310_s3 + $0x580] ss:$16 sps:$4 sm:$0xff]  }
 0x205   : > { %2833 = vmatpush1.bf16.msra.mxu0 %v4630_v52  ;;  %2956 = vmatpush1.bf16.msra.mxu1 %v4633_v53  ;;  %v4723_v52 = vld [vmem:[%s6310_s3 + $0x588] ss:$16 sps:$4 sm:$0xff]   ;;  %v4728_v53 = vld [vmem:[%s6310_s3 + $0x5a4] ss:$16 sps:$4 sm:$0xff]  }
 0x206   : > { %2834 = vmatprep.subr.bf16.mxu0 %v4638_v54  ;;  %2957 = vmatprep.subr.bf16.mxu1 %v4641_v55  ;;  %v4731_v54 = vld [vmem:[%s6310_s3 + $0x5ac] ss:$16 sps:$4 sm:$0xff]   ;;  %v4726_v55 = vld [vmem:[%s6310_s3 + $0x5a0] ss:$16 sps:$4 sm:$0xff]  }
 0x209   : > { %2835 = vmatpush1.bf16.msra.mxu0 %v4636_v56  ;;  %2958 = vmatpush1.bf16.msra.mxu1 %v4639_v57  ;;  %v4729_v56 = vld [vmem:[%s6310_s3 + $0x5a8] ss:$16 sps:$4 sm:$0xff]   ;;  %v4734_v57 = vld [vmem:[%s6310_s3 + $0x5c4] ss:$16 sps:$4 sm:$0xff]  }
 0x20a   : > { %2836 = vmatprep.subr.bf16.mxu0 %v4644_v58  ;;  %2959 = vmatprep.subr.bf16.mxu1 %v4647_v60  ;;  %v4737_v58 = vld [vmem:[%s6310_s3 + $0x5cc] ss:$16 sps:$4 sm:$0xff]   ;;  %v4732_v60 = vld [vmem:[%s6310_s3 + $0x5c0] ss:$16 sps:$4 sm:$0xff]  }
 0x20d   : > { %2837 = vmatpush1.bf16.msra.mxu0 %v4642_v61  ;;  %2960 = vmatpush1.bf16.msra.mxu1 %v4645_v62  ;;  %v4735_v61 = vld [vmem:[%s6310_s3 + $0x5c8] ss:$16 sps:$4 sm:$0xff]   ;;  %v4740_v62 = vld [vmem:[%s6310_s3 + $0x5e4] ss:$16 sps:$4 sm:$0xff]  }
 0x20e   : > { %2847 = vmatprep.subr.bf16.mxu0 %v4650_v63  ;;  %2970 = vmatprep.subr.bf16.mxu1 %v4653_v0  ;;  %v4743_v63 = vld [vmem:[%s6310_s3 + $0x5ec] ss:$16 sps:$4 sm:$0xff]   ;;  %v4738_v0 = vld [vmem:[%s6310_s3 + $0x5e0] ss:$16 sps:$4 sm:$0xff]  }
 0x210   : > { %2839 = vmatmul.mubr.bf16.vlgmr.msra.gmra.mrb[4].mxu0 %v1609_v2  ;;  %2962 = vmatmul.mubr.bf16.vlgmr.msra.gmra.mrb[4].mxu1 %v1609_v2  ;;  %v4744_v2 = vld [vmem:[%s6312_s5 + $0x40] sm:$0xff]  }
 0x211   : > { %2848 = vmatpush1.bf16.msra.mxu0 %v4648_v1  ;;  %2879 = vmatprep.mubr.bf16.mxu0 %v1612_v5  ;;  %v4741_v1 = vld [vmem:[%s6310_s3 + $0x5e8] ss:$16 sps:$4 sm:$0xff]  }
 0x212   : > { %2971 = vmatpush1.bf16.msra.mxu1 %v4651_v4  ;;  %3002 = vmatprep.mubr.bf16.mxu1 %v1612_v5  ;;  %v4746_v4 = vld [vmem:[%s6312_s5 + $0xc0] sm:$0xff]  }
 0x213   : > { %2849 = vmatprep.subr.bf16.mxu0 %v4656_v6  ;;  %2972 = vmatprep.subr.bf16.mxu1 %v4659_v7  ;;  %v4745_v5 = vld [vmem:[%s6312_s5] sm:$0xff]   ;;  %v1611_v6 = vpack.c.bf16 %v5733_v12, %v5733_v12  ;;  %v4749_v12 = vld [vmem:[%s6312_s5 + $0x8] sm:$0xff]  }
 0x214   : > { %v4747_v7 = vld [vmem:[%s6312_s5 + $0x80] sm:$0xff]  }
 0x215   : > { %2850 = vmatpush1.bf16.msra.mxu0 %v4654_v59  ;;  %v4748_v59 = vld [vmem:[%s6312_s5 + $0x48] sm:$0xff]  }
 0x216   : > { %2973 = vmatpush1.bf16.msra.mxu1 %v4657_v3  ;;  %2851 = vmatprep.subr.bf16.mxu0 %v4662_v11  ;;  %v4750_v3 = vld [vmem:[%s6312_s5 + $0xc8] sm:$0xff]  }
 0x217   : > { %2974 = vmatprep.subr.bf16.mxu1 %v4665_v14  ;;  %v4751_v11 = vld [vmem:[%s6312_s5 + $0x88] sm:$0xff]   ;;  %v4752_v14 = vld [vmem:[%s6312_s5 + $0x50] sm:$0xff]  }
 0x219   : > { %2852 = vmatpush1.bf16.msra.mxu0 %v4660_v15  ;;  %v4754_v15 = vld [vmem:[%s6312_s5 + $0xd0] sm:$0xff]  }
 0x21a   : > { %2975 = vmatpush1.bf16.msra.mxu1 %v4663_v17  ;;  %2853 = vmatprep.subr.bf16.mxu0 %v4668_v18  ;;  %v4753_v17 = vld [vmem:[%s6312_s5 + $0x10] sm:$0xff]  }
 0x21b   : > { %2976 = vmatprep.subr.bf16.mxu1 %v4671_v19  ;;  %v4755_v18 = vld [vmem:[%s6312_s5 + $0x90] sm:$0xff]   ;;  %v4756_v19 = vld [vmem:[%s6312_s5 + $0x58] sm:$0xff]  }
 0x21d   : > { %2854 = vmatpush1.bf16.msra.mxu0 %v4666_v20  ;;  %v4758_v20 = vld [vmem:[%s6312_s5 + $0xd8] sm:$0xff]  }
 0x21e   : > { %2977 = vmatpush1.bf16.msra.mxu1 %v4669_v21  ;;  %2855 = vmatprep.subr.bf16.mxu0 %v4674_v22  ;;  %v4757_v21 = vld [vmem:[%s6312_s5 + $0x18] sm:$0xff]  }
 0x21f   : > { %2978 = vmatprep.subr.bf16.mxu1 %v4677_v23  ;;  %v4759_v22 = vld [vmem:[%s6312_s5 + $0x98] sm:$0xff]   ;;  %v4760_v23 = vld [vmem:[%s6312_s5 + $0x60] sm:$0xff]  }
 0x221   : > { %2856 = vmatpush1.bf16.msra.mxu0 %v4672_v24  ;;  %v4762_v24 = vld [vmem:[%s6312_s5 + $0xe0] sm:$0xff]  }
 0x222   : > { %2979 = vmatpush1.bf16.msra.mxu1 %v4675_v25  ;;  %2857 = vmatprep.subr.bf16.mxu0 %v4680_v26  ;;  %v4761_v25 = vld [vmem:[%s6312_s5 + $0x20] sm:$0xff]  }
 0x223   : > { %2980 = vmatprep.subr.bf16.mxu1 %v4683_v27  ;;  %v4763_v26 = vld [vmem:[%s6312_s5 + $0xa0] sm:$0xff]   ;;  %v4764_v27 = vld [vmem:[%s6312_s5 + $0x68] sm:$0xff]  }
 0x225   : > { %2858 = vmatpush1.bf16.msra.mxu0 %v4678_v8  ;;  %v4765_v8 = vld [vmem:[%s6312_s5 + $0x28] sm:$0xff]  }
 0x226   : > { %2981 = vmatpush1.bf16.msra.mxu1 %v4681_v9  ;;  %2859 = vmatprep.subr.bf16.mxu0 %v4686_v28  ;;  %v4766_v9 = vld [vmem:[%s6312_s5 + $0xe8] sm:$0xff]  }
 0x227   : > { %2982 = vmatprep.subr.bf16.mxu1 %v4689_v29  ;;  %v4767_v28 = vld [vmem:[%s6312_s5 + $0xa8] sm:$0xff]   ;;  %v4768_v29 = vld [vmem:[%s6312_s5 + $0x70] sm:$0xff]  }
 0x229   : > { %2860 = vmatpush1.bf16.msra.mxu0 %v4684_v30  ;;  %v4770_v30 = vld [vmem:[%s6312_s5 + $0xf0] sm:$0xff]  }
 0x22a   : > { %2983 = vmatpush1.bf16.msra.mxu1 %v4687_v31  ;;  %2861 = vmatprep.subr.bf16.mxu0 %v4692_v32  ;;  %v4769_v31 = vld [vmem:[%s6312_s5 + $0x30] sm:$0xff]  }
 0x22b   : > { %2984 = vmatprep.subr.bf16.mxu1 %v4695_v33  ;;  %v4771_v32 = vld [vmem:[%s6312_s5 + $0xb0] sm:$0xff]   ;;  %v4772_v33 = vld [vmem:[%s6312_s5 + $0x78] sm:$0xff]  }
 0x22d   : > { %2862 = vmatpush1.bf16.msra.mxu0 %v4690_v34  ;;  %v4774_v34 = vld [vmem:[%s6312_s5 + $0xf8] sm:$0xff]  }
 0x22e   : > { %2985 = vmatpush1.bf16.msra.mxu1 %v4693_v10  ;;  %2863 = vmatprep.subr.bf16.mxu0 %v4698_v13  ;;  %v4773_v10 = vld [vmem:[%s6312_s5 + $0x38] sm:$0xff]  }
 0x22f   : > { %2986 = vmatprep.subr.bf16.mxu1 %v4701_v35  ;;  %v4775_v13 = vld [vmem:[%s6312_s5 + $0xb8] sm:$0xff]   ;;  %v4860_v35 = vmov 0.0  }
 0x231   : > { %2864 = vmatpush1.bf16.msra.mxu0 %v4696_v36 }
 0x232   : > { %2987 = vmatpush1.bf16.msra.mxu1 %v4699_v37  ;;  %2865 = vmatprep.subr.bf16.mxu0 %v4704_v38 }
 0x233   : > { %2988 = vmatprep.subr.bf16.mxu1 %v4707_v40 }
 0x235   : > { %2866 = vmatpush1.bf16.msra.mxu0 %v4702_v16 }
 0x236   : > { %2989 = vmatpush1.bf16.msra.mxu1 %v4705_v41  ;;  %2867 = vmatprep.subr.bf16.mxu0 %v4710_v42 }
 0x237   : > { %2990 = vmatprep.subr.bf16.mxu1 %v4713_v43 }
 0x239   : > { %2868 = vmatpush1.bf16.msra.mxu0 %v4708_v44 }
 0x23a   : > { %2991 = vmatpush1.bf16.msra.mxu1 %v4711_v39  ;;  %2869 = vmatprep.subr.bf16.mxu0 %v4716_v45  ;;  %v4000_v39 = vld [vmem:[%s6311_s4] ss:$0 sm:$0xff] }
 0x23b   : > { %2992 = vmatprep.subr.bf16.mxu1 %v4719_v46 }
 0x23d   : > { %2870 = vmatpush1.bf16.msra.mxu0 %v4714_v47 }
 0x23e   : > { %2993 = vmatpush1.bf16.msra.mxu1 %v4717_v48  ;;  %2871 = vmatprep.subr.bf16.mxu0 %v4722_v49 }
 0x23f   : > { %2994 = vmatprep.subr.bf16.mxu1 %v4725_v50 }
 0x241   : > { %2872 = vmatpush1.bf16.msra.mxu0 %v4720_v51 }
 0x242   : > { %2995 = vmatpush1.bf16.msra.mxu1 %v4723_v52  ;;  %2873 = vmatprep.subr.bf16.mxu0 %v4728_v53 }
 0x243   : > { %2996 = vmatprep.subr.bf16.mxu1 %v4731_v54 }
 0x245   : > { %2874 = vmatpush1.bf16.msra.mxu0 %v4726_v55  ;;  %v4776_v55 = vld [vmem:[%s6312_s5 + $0x100] sm:$0xff]  }
 0x246   : > { %2997 = vmatpush1.bf16.msra.mxu1 %v4729_v56  ;;  %2875 = vmatprep.subr.bf16.mxu0 %v4734_v57  ;;  %v4777_v57 = vld [vmem:[%s6312_s5 + $0x108] sm:$0xff]  }
 0x247   : > { %2998 = vmatprep.subr.bf16.mxu1 %v4737_v58  ;;  %v4778_v58 = vld [vmem:[%s6312_s5 + $0x110] sm:$0xff]  }
 0x249   : > { %2876 = vmatpush1.bf16.msra.mxu0 %v4732_v60  ;;  %v4779_v60 = vld [vmem:[%s6312_s5 + $0x118] sm:$0xff]  }
 0x24a   : > { %2999 = vmatpush1.bf16.msra.mxu1 %v4735_v61  ;;  %2877 = vmatprep.subr.bf16.mxu0 %v4740_v62  ;;  %v4780_v61 = vld [vmem:[%s6312_s5 + $0x120] sm:$0xff]   ;;  %v4781_v62 = vld [vmem:[%s6312_s5 + $0x128] sm:$0xff]  }
 0x24b   : > { %3000 = vmatprep.subr.bf16.mxu1 %v4743_v63  ;;  %v4782_v63 = vld [vmem:[%s6312_s5 + $0x130] sm:$0xff]  }
 0x24d   : > { %2878 = vmatpush1.bf16.msra.mxu0 %v4738_v0  ;;  %v4783_v0 = vld [vmem:[%s6312_s5 + $0x138] sm:$0xff]  }
 0x24e   : > { %3001 = vmatpush1.bf16.msra.mxu1 %v4741_v1  ;;  %4053 = vmatprep.subr.bf16.mxu0 %v4744_v2 }
 0x24f   : > { %4075 = vmatprep.subr.bf16.mxu1 %v4746_v4  ;;  %v4784_v4 = vld [vmem:[%s6314_s7] sm:$0xff]  }
 0x250   : > { %2880 = vmatmul.mubr.bf16.vlgmr.msra.gmra.mrb[4].mxu0 %v1611_v6 }
 0x251   : > { %3003 = vmatmul.mubr.bf16.vlgmr.msra.gmra.mrb[4].mxu1 %v1611_v6  ;;  %4054 = vmatpush3.bf16.msra.mxu0 %v4745_v5  ;;  %v4785_v5 = vld [vmem:[%s6314_s7 + $0x8] sm:$0xff]   ;;  %v4786_v6 = vld [vmem:[%s6314_s7 + $0x10] sm:$0xff]  }
 0x252   : > { %4076 = vmatpush3.bf16.msra.mxu1 %v4747_v7  ;;  %4055 = vmatprep.subr.bf16.mxu0 %v4748_v59  ;;  %v4787_v7 = vld [vmem:[%s6314_s7 + $0x18] sm:$0xff]   ;;  %v4788_v59 = vld [vmem:[%s6314_s7 + $0x20] sm:$0xff]  }
 0x253   : > { %4077 = vmatprep.subr.bf16.mxu1 %v4750_v3  ;;  %v4789_v3 = vld [vmem:[%s6314_s7 + $0x28] sm:$0xff]  }
 0x255   : > { %4056 = vmatpush3.bf16.msra.mxu0 %v4749_v12  ;;  %v4790_v12 = vld [vmem:[%s6314_s7 + $0x30] sm:$0xff]  }
 0x256   : > { %4078 = vmatpush3.bf16.msra.mxu1 %v4751_v11  ;;  %4057 = vmatprep.subr.bf16.mxu0 %v4752_v14  ;;  %v4791_v11 = vld [vmem:[%s6314_s7 + $0x38] sm:$0xff]  }
 0x257   : > { %4079 = vmatprep.subr.bf16.mxu1 %v4754_v15 }
 0x259   : > { %4058 = vmatpush3.bf16.msra.mxu0 %v4753_v17  ;;  %v3117_v17 = vld [vmem:[%s6313_s6] sm:$0x1] }
 0x25a   : > { %4080 = vmatpush3.bf16.msra.mxu1 %v4755_v18  ;;  %4059 = vmatprep.subr.bf16.mxu0 %v4756_v19 }
 0x25b   : > { %4081 = vmatprep.subr.bf16.mxu1 %v4758_v20 }
 0x25d   : > { %4060 = vmatpush3.bf16.msra.mxu0 %v4757_v21 }
 0x25e   : > { %4082 = vmatpush3.bf16.msra.mxu1 %v4759_v22  ;;  %4061 = vmatprep.subr.bf16.mxu0 %v4760_v23 }
 0x25f   : > { %4083 = vmatprep.subr.bf16.mxu1 %v4762_v24 }
 0x261   : > { %4062 = vmatpush3.bf16.msra.mxu0 %v4761_v25 }
 0x262   : > { %4084 = vmatpush3.bf16.msra.mxu1 %v4763_v26  ;;  %4063 = vmatprep.subr.bf16.mxu0 %v4764_v27 }
 0x263   : > { %4085 = vmatprep.subr.bf16.mxu1 %v4766_v9 }
 0x265   : > { %4064 = vmatpush3.bf16.msra.mxu0 %v4765_v8 }
 0x266   : > { %4086 = vmatpush3.bf16.msra.mxu1 %v4767_v28  ;;  %4065 = vmatprep.subr.bf16.mxu0 %v4768_v29 }
 0x267   : > { %4087 = vmatprep.subr.bf16.mxu1 %v4770_v30 }
 0x269   : > { %4066 = vmatpush3.bf16.msra.mxu0 %v4769_v31 }
 0x26a   : > { %4088 = vmatpush3.bf16.msra.mxu1 %v4771_v32  ;;  %4067 = vmatprep.subr.bf16.mxu0 %v4772_v33  ;;  %v3496_v33 = vld [vmem:[%s6315_s8] sm:$0x1] }
 0x26b   : > { %4089 = vmatprep.subr.bf16.mxu1 %v4774_v34 }
 0x26d   : > { %4068 = vmatpush3.bf16.msra.mxu0 %v4773_v10 }
 0x26e   : > { %4090 = vmatpush3.bf16.msra.mxu1 %v4775_v13  ;;  %4115 = vmatprep.subr.bf16.mxu0 %v4860_v35 }
 0x26f   : > { %4135 = vmatprep.subr.bf16.mxu1 %v4860_v35 }
 0x323   : > { %v2881_v36 = vpop.f32.mrb[4].mxu0 }
 0x324   : > { %v3004_v37 = vpop.f32.mrb[4].mxu1  ;;  %v2883_v38 = vpop.f32.mrb[5].mxu0 }
 0x325   : > { %v3011_v40 = vmax.f32 %v2881_v36, %v2883_v38  ;;  %v3006_v16 = vpop.f32.mrb[5].mxu1  ;;  %v2885_v41 = vpop.f32.mrb[6].mxu0 }
 0x326   : > { %v3012_v42 = vmax.f32 %v3004_v37, %v3006_v16  ;;  %v3008_v43 = vpop.f32.mrb[6].mxu1  ;;  %v2886_v44 = vpop.f32.mrb[7].mxu0 }
 0x327   : > { %v3009_v45 = vpop.f32.mrb[7].mxu1 }
 0x328   : > { %v3013_v46 = vmax.f32 %v3011_v40, %v3012_v42 }
 0x32a   : > { %v3021_v47 = vadd.f32 %v4000_v39, %v3013_v46 }
 0x32c   : > { %v3022_v48 = vmax.f32 %v3021_v47, 0.0 }
 0x32e   : > { %v3024_v49 = vrot.slane %v3022_v48, 1  ;;  %v3028_v50 = vrot.slane %v3022_v48, 3  ;;  %v3026_v51 = vrot.slane %v3022_v48, 2  ;;  %v3032_v56 = vpack.c.bf16 %v3022_v48, %v3022_v48 }
 0x32f   : > { %v3030_v1 = vrot.slane %v3022_v48, 4 }
 0x330   : > { %v3033_v52 = vpack.c.bf16 %v3024_v49, %v3024_v49  ;;  %v3035_v53 = vpack.c.bf16 %v3028_v50, %v3028_v50  ;;  %v3034_v54 = vpack.c.bf16 %v3026_v51, %v3026_v51 }
 0x331   : > { %v3036_v2 = vpack.c.bf16 %v3030_v1, %v3030_v1 }
 0x332   : > { %3390 = vmatprep.mubr.bf16.mxu0 %v3033_v52  ;;  %3430 = vmatprep.mubr.bf16.mxu1 %v3035_v53 }
 0x333   : > { %3391 = vmatmul.mubr.bf16.vlgmr.msra.gmra.mrb[8].mxu0 %v3032_v56  ;;  %3431 = vmatmul.mubr.bf16.vlgmr.msra.gmra.mrb[8].mxu1 %v3034_v54 }
 0x334   : > { %4116 = vmatpush3.bf16.msra.mxu0 %v4776_v55  ;;  %4131 = vmatprep.mubr.msk.bf16.mxu0 %vm4861_vm7, %v4860_v35 }
 0x335   : > { %4117 = vmatprep.subr.bf16.mxu0 %v4860_v35  ;;  %4151 = vmatprep.mubr.msk.bf16.mxu1 %vm4861_vm7, %v4860_v35 }
 0x336   : > { %4136 = vmatpush3.bf16.msra.mxu1 %v4784_v4 }
 0x337   : > { %4137 = vmatprep.subr.bf16.mxu1 %v4860_v35 }
 0x338   : > { %4118 = vmatpush3.bf16.msra.mxu0 %v4777_v57 }
 0x339   : > { %4119 = vmatprep.subr.bf16.mxu0 %v4860_v35 }
 0x33a   : > { %4138 = vmatpush3.bf16.msra.mxu1 %v4785_v5 }
 0x33b   : > { %4139 = vmatprep.subr.bf16.mxu1 %v4860_v35 }
 0x33c   : > { %4120 = vmatpush3.bf16.msra.mxu0 %v4778_v58 }
 0x33d   : > { %4121 = vmatprep.subr.bf16.mxu0 %v4860_v35 }
 0x33e   : > { %4140 = vmatpush3.bf16.msra.mxu1 %v4786_v6 }
 0x33f   : > { %4141 = vmatprep.subr.bf16.mxu1 %v4860_v35 }
 0x340   : > { %4122 = vmatpush3.bf16.msra.mxu0 %v4779_v60 }
 0x341   : > { %4123 = vmatprep.subr.bf16.mxu0 %v4860_v35 }
 0x342   : > { %4142 = vmatpush3.bf16.msra.mxu1 %v4787_v7 }
 0x343   : > { %4143 = vmatprep.subr.bf16.mxu1 %v4860_v35 }
 0x344   : > { %4124 = vmatpush3.bf16.msra.mxu0 %v4780_v61 }
 0x345   : > { %4125 = vmatprep.subr.bf16.mxu0 %v4860_v35 }
 0x346   : > { %4144 = vmatpush3.bf16.msra.mxu1 %v4788_v59 }
 0x347   : > { %4145 = vmatprep.subr.bf16.mxu1 %v4860_v35 }
 0x348   : > { %4126 = vmatpush3.bf16.msra.mxu0 %v4781_v62 }
 0x349   : > { %4127 = vmatprep.subr.bf16.mxu0 %v4860_v35 }
 0x34a   : > { %4146 = vmatpush3.bf16.msra.mxu1 %v4789_v3 }
 0x34b   : > { %4147 = vmatprep.subr.bf16.mxu1 %v4860_v35 }
 0x34c   : > { %4128 = vmatpush3.bf16.msra.mxu0 %v4782_v63 }
 0x34d   : > { %4129 = vmatprep.subr.bf16.mxu0 %v4860_v35 }
 0x34e   : > { %4148 = vmatpush3.bf16.msra.mxu1 %v4790_v12 }
 0x34f   : > { %4149 = vmatprep.subr.bf16.mxu1 %v4860_v35 }
 0x350   : > { %4130 = vmatpush3.bf16.msra.mxu0 %v4783_v0 }
 0x352   : > { %4150 = vmatpush3.bf16.msra.mxu1 %v4791_v11 }
 0x353   : > { %4132 = vmatmul.mubr.bf16.vlgmr.msra.gmra.mrb[12].mxu0 %v3036_v2 }
 0x406   : > { %v4069_v14 = vpop.f32.mrb[8].mxu0  ;;  %v4091_v15 = vpop.f32.mrb[8].mxu1 }
 0x407   : > { %v4070_v18 = vpop.f32.mrb[9].mxu0  ;;  %v4092_v19 = vpop.f32.mrb[9].mxu1 }
 0x408   : > { %v4071_v20 = vadd.f32 %v4070_v18, %v4069_v14  ;;  %v4093_v21 = vadd.f32 %v4092_v19, %v4091_v15  ;;  %v4072_v22 = vpop.f32.mrb[10].mxu0  ;;  %v4094_v23 = vpop.f32.mrb[10].mxu1 }
 0x409   : > { %v4073_v24 = vpop.f32.mrb[11].mxu0  ;;  %v4095_v25 = vpop.f32.mrb[11].mxu1 }
 0x40a   : > { %v3393_v26 = vadd.f32 %v4071_v20, %v3117_v17 }
 0x40c   : > { %v3433_v27 = vadd.f32 %v4093_v21, %v3393_v26 }
 0x426   : > { %v3472_v8 = vpop.f32.mrb[12].mxu0 }
 0x427   : > { %v3473_v9 = vadd.f32 %v3472_v8, %v3433_v27  ;;  %v4133_v28 = vpop.f32.mrb[13].mxu0 }
 0x428   : > { %v3475_v29 = vpop.f32.mrb[14].mxu0 }
 0x429   : > { %v3478_v30 = vmax.f32 %v3473_v9, 0.0  ;;  %v4134_v31 = vpop.f32.mrb[15].mxu0 }
 0x42b   : > { %v3479_v32 = vpack.c.bf16 %v3478_v30, %v3478_v30 }
 0x42d   : > { %4152 = vmatmul.mubr.bf16.vlgmr.msra.gmra.mrb[12].mxu1 %v3479_v32 }
 0x500   : > { %v3579_v34 = vpop.f32.mrb[12].mxu1 }
 0x501   : > { %v3580_v10 = vadd.f32 %v3579_v34, %v3496_v33  ;;  %v4153_v13 = vpop.f32.mrb[13].mxu1 }
 0x502   : > { %v3582_v35 = vpop.f32.mrb[14].mxu1 }
 0x503   : > { %3585 = vst [vmem:[%s324_s17] sm:$0x1] %v3580_v10  ;;  %v4154_v36 = vpop.f32.mrb[15].mxu1 }
 0x504   : > { %4807 = shalt.err (!%p4804_p3)
}
 0x505   : > { %s4808_s29 = scalar_lea.hbm %s6265_s26, 16  ;;  %s4812_s17 = scalar_lea.hbm %s6316_s9, 32 }
 0x506   : > { %p4809_p4 = scmp.ne.s32.totalorder %s6265_s26, %s4808_s29  ;;  %p4813_p9 = scmp.lt.u32.totalorder %s6265_s26, %s6316_s9 }
 0x507   : > { %p4814_p10 = scmp.lt.u32.totalorder %s4812_s17, %s4808_s29  ;;  %p4816_p12 = scmp.lt.u32.totalorder %s4808_s29, %s6265_s26 }
 0x508   : > { %p4810_p7 = pnand %p4809_p4, %p4951_p5 }
 0x509   : > { %p4815_p11 = por %p4814_p10, %p4813_p9 }
 0x50a   : > { %p4811_p8 = pneg %p4810_p7 }
 0x50b   : > { %p4817_p13 = por %p4816_p12, %p4815_p11 }
 0x50d   : > { %p4818_p0 = pnand %p4817_p13, %p4811_p8 }
 0x50f   : > { %4821 = shalt.err (!%p4818_p0)
}
 0x510   : > { %4187 = dma.vmem_to_hbm [thread:$0]  (%p4951_p5), %s6267_s22, 16, %s6265_s26, %s3587_s21  }
 0x511 PF: > { %p4193_p1 = scmp.ge.s32.totalorder %s4856_s12, 2  ;;  %s3611_s13 = sand.u32 1, %s4844_s30  }
 0x512   : > { %s3612_s27 = scalar_lea.sflag [#allocation3], %s3611_s13 }
 0x513   : > { %p4190_p2 = pnand %p4193_p1, %p4955_p6 }
 0x515   : > { %4839 = dma.done.wait (!%p4190_p2), %s3612_s27, 16  }
 0x516   : > { %4841 = vsyncadd (!%p4190_p2), %s3612_s27, 4294967280  ;;  %p19_p3 = scmp.ge.s32.totalorder %s4938_s15, 4   ;;  %s6319_s30 = smov %s4848_s10 }
 0x517   : > { %s6320_s10 = smov %s4852_s11  ;;  %s6321_s11 = smov %s4949_s18 }
 0x518   : > { %s6322_s12 = smov %s4938_s15  ;;  %21 = sbr.rel (!%p19_p3) target bundleno = 3 (0x3), region = 91 }
 0x51f   :  { %3616 = vsyncpa [#allocation3], 1 }
 0x520   :  { %3618 = vsyncpa [#allocation3 + $0x1], 1 }

</bundles_post_ra>
